<compile_context>
chip_gen: v5e
topology: v5e:2x2
jax: 0.10.0
libtpu: 0.0.40
codegen_flags: <defaults>
</compile_context>

<pallas_src>
import jax
import jax.numpy as jnp
from jax.experimental import pallas as pl
from jax.experimental.pallas import tpu as pltpu

BN_EPS = 1e-5
LANE = 128
MAX_TM = 1024


def _round_up(x, m):
    return ((x + m - 1) // m) * m


def _row_tile(m):
    """Row-tile for the M (= N*OH*OW) grid axis.

    * m <= 16: single full-extent block (block dim == array dim is always legal).
    * otherwise: bf16-native 16-row multiple, capped at MAX_TM, aimed at >=2
      roughly even grid steps so the 'parallel' axis shards across v7x's 2 TCs.
    """
    if m <= 16:
        return m
    half = _round_up(pl.cdiv(m, 2), 16)
    return max(16, min(MAX_TM, half))


def _parallel_params():
    return pltpu.CompilerParams(dimension_semantics=("parallel",))


# ----------------------------- Pallas kernels -----------------------------

def gemm_shift_prelu_kernel(x_ref, w_ref, p_ref, o_ref):
    # y = PReLU(x @ w + shift); conv bias + BatchNorm are pre-folded into
    # w / shift (p_ref row 0); PReLU slope broadcast in p_ref row 1.
    y = jnp.dot(x_ref[...], w_ref[...], preferred_element_type=jnp.float32)
    y = y + p_ref[0:1, :]
    y = jnp.where(y > 0, y, p_ref[1:2, :] * y)
    o_ref[...] = y.astype(o_ref.dtype)


def maxpool9_kernel(win_ref, o_ref):
    # win: (9, TM, C) pre-sliced 3x3 window taps, channels on lanes -> VPU max.
    m = win_ref[0]
    for k in range(1, 9):
        m = jnp.maximum(m, win_ref[k])
    o_ref[...] = m


def fc_heads_kernel(f_ref, w1_ref, p1_ref, wh_ref, bh_ref, o_ref):
    # fc1 (Linear + PReLU) fused with both output heads into one lane-dense
    # (TM, 128) slab: col 0 = sigmoid(conf logit), cols 1..4 = bbox offsets.
    f = f_ref[...]
    y = jnp.dot(f, w1_ref[...], preferred_element_type=jnp.float32)
    y = y + p1_ref[0:1, :]
    y = jnp.where(y > 0, y, p1_ref[1:2, :] * y)
    h = jnp.dot(y.astype(wh_ref.dtype), wh_ref[...],
                preferred_element_type=jnp.float32) + bh_ref[...]
    col = jax.lax.broadcasted_iota(jnp.int32, h.shape, 1)
    o_ref[...] = jnp.where(col == 0, jax.nn.sigmoid(h), h)


# ----------------------------- Pallas wrappers -----------------------------

def gemm_shift_prelu(x, w, params, out_dtype=jnp.bfloat16):
    # x: (M, K) bf16, w: (K, 128) bf16, params: (2, 128) f32 [shift; prelu slope]
    M, K = x.shape
    cp = w.shape[1]
    tm = _row_tile(M)
    return pl.pallas_call(
        gemm_shift_prelu_kernel,
        out_shape=jax.ShapeDtypeStruct((M, cp), out_dtype),
        grid=(pl.cdiv(M, tm),),
        in_specs=[pl.BlockSpec((tm, K), lambda i: (i, 0)),
                  pl.BlockSpec((K, cp), lambda i: (0, 0)),
                  pl.BlockSpec((2, cp), lambda i: (0, 0))],
        out_specs=pl.BlockSpec((tm, cp), lambda i: (i, 0)),
        compiler_params=_parallel_params(),
    )(x, w, params)


def maxpool_3x3_s2(x):
    # x: (N, H, W, C) channels-last; kernel 3, stride 2, no padding.
    N, H, W, C = x.shape
    oh = (H - 3) // 2 + 1
    ow = (W - 3) // 2 + 1
    taps = []
    for di in range(3):
        for dj in range(3):
            taps.append(x[:, di:di + 2 * (oh - 1) + 1:2,
                            dj:dj + 2 * (ow - 1) + 1:2, :].reshape(N * oh * ow, C))
    win = jnp.stack(taps, axis=0)                     # (9, M, C), channels on lanes
    M = N * oh * ow
    tm = _row_tile(M)
    out = pl.pallas_call(
        maxpool9_kernel,
        out_shape=jax.ShapeDtypeStruct((M, C), x.dtype),
        grid=(pl.cdiv(M, tm),),
        in_specs=[pl.BlockSpec((9, tm, C), lambda i: (0, i, 0))],
        out_specs=pl.BlockSpec((tm, C), lambda i: (i, 0)),
        compiler_params=_parallel_params(),
    )(win)
    return out.reshape(N, oh, ow, C)


def fc1_heads(feat, fc1, heads):
    # feat: (N, 576) bf16 -> (conf (N,1), offset (N,4)) via one fused kernel.
    N, K = feat.shape
    tm = _row_tile(N)
    out = pl.pallas_call(
        fc_heads_kernel,
        out_shape=jax.ShapeDtypeStruct((N, LANE), jnp.float32),
        grid=(pl.cdiv(N, tm),),
        in_specs=[pl.BlockSpec((tm, K), lambda i: (i, 0)),
                  pl.BlockSpec((K, LANE), lambda i: (0, 0)),
                  pl.BlockSpec((2, LANE), lambda i: (0, 0)),
                  pl.BlockSpec((LANE, LANE), lambda i: (0, 0)),
                  pl.BlockSpec((1, LANE), lambda i: (0, 0))],
        out_specs=pl.BlockSpec((tm, LANE), lambda i: (i, 0)),
        compiler_params=_parallel_params(),
    )(feat, fc1['w'], fc1['p'], heads['w'], heads['b'])
    return out[:, 0:1], out[:, 1:5]


# ----------------------------- JAX glue -----------------------------

def im2col_nhwc(x, kh, kw, stride, pad, k_pad):
    # x: (N, H, W, Cin_real) -> patches (N*OH*OW, k_pad) in (di, dj, c) order.
    # K zero-padding happens inside the concat (no extra pad copy of the slab).
    if pad:
        x = jnp.pad(x, ((0, 0), (pad, pad), (pad, pad), (0, 0)))
    N, H, W, C = x.shape
    oh = (H - kh) // stride + 1
    ow = (W - kw) // stride + 1
    taps = []
    for di in range(kh):
        for dj in range(kw):
            taps.append(x[:, di:di + stride * (oh - 1) + 1:stride,
                            dj:dj + stride * (ow - 1) + 1:stride, :])
    k_real = kh * kw * C
    assert k_pad >= k_real
    if k_pad > k_real:
        taps.append(jnp.zeros((N, oh, ow, k_pad - k_real), x.dtype))
    patches = jnp.concatenate(taps, axis=-1).reshape(N * oh * ow, k_pad)
    return patches, oh, ow


def conv_block(x, layer, k, stride, pad):
    # x: (N, H, W, Cin_real) NHWC (real channels only, no K padding).
    N = x.shape[0]
    patches, oh, ow = im2col_nhwc(x.astype(jnp.bfloat16), k, k, stride, pad,
                                  k_pad=layer['w'].shape[0])
    y = gemm_shift_prelu(patches, layer['w'], layer['p'])
    return y.reshape(N, oh, ow, LANE)


def init_params(key):
    # Deterministic synthetic parameters, shapes follow RNet.__init__.
    # BN scale/shift and conv bias folded into the GEMM weight/shift; output
    # channels zero-padded to 128 lanes (lane-dense GEMM output); K axis padded
    # only up to the layer's k_pad (zero rows match the zero patch columns).
    # TODO(synk): BatchNorm2d is implemented in inference mode (running stats
    # folded); training-mode batch statistics are not reproduced.
    p = {}

    def nxt():
        nonlocal key
        key, sub = jax.random.split(key)
        return sub

    def conv_bn(name, cin, cout, k, k_pad):
        w = jax.random.normal(nxt(), (cout, cin, k, k), jnp.float32) * 0.1
        b = jax.random.normal(nxt(), (cout,), jnp.float32) * 0.1
        gamma = 1.0 + 0.1 * jax.random.normal(nxt(), (cout,), jnp.float32)
        beta = 0.1 * jax.random.normal(nxt(), (cout,), jnp.float32)
        mean = 0.1 * jax.random.normal(nxt(), (cout,), jnp.float32)
        var = 1.0 + 0.1 * jnp.abs(jax.random.normal(nxt(), (cout,), jnp.float32))
        scale = gamma / jnp.sqrt(var + BN_EPS)
        shift = b * scale + (beta - mean * scale)        # bias folded through BN
        wf = w * scale[:, None, None, None]              # BN scale folded into w
        wmat = jnp.transpose(wf, (2, 3, 1, 0)).reshape(k * k * cin, cout)
        wmat = jnp.pad(wmat, ((0, k_pad - k * k * cin), (0, LANE - cout)))
        shift_row = jnp.pad(shift, (0, LANE - cout))
        alpha_row = jnp.full((LANE,), 0.25, jnp.float32)  # nn.PReLU() default
        p[name] = dict(w=wmat.astype(jnp.bfloat16),
                       p=jnp.stack([shift_row, alpha_row]).astype(jnp.float32))

    conv_bn('c1a', 3, 28, 3, k_pad=32)     # Conv2d(3, 28, 3, 1, 1) + BN + PReLU
    conv_bn('c1b', 28, 28, 3, k_pad=256)   # Conv2d(28, 28, 3, 2, 0) + BN + PReLU
    conv_bn('c2a', 28, 48, 3, k_pad=256)   # Conv2d(28, 48, 3, 1, 0) + BN + PReLU
    conv_bn('c3', 48, 64, 2, k_pad=192)    # Conv2d(48, 64, 2, 1, 0) + BN + PReLU

    # fc1: Linear(576 -> 128) + PReLU. Reorder the PyTorch NCHW flatten (c,h,w)
    # to our channels-last flatten (h,w,c); real 64 channels only -> K = 576.
    wfc = jax.random.normal(nxt(), (128, 576), jnp.float32) * 0.05
    bfc = jax.random.normal(nxt(), (128,), jnp.float32) * 0.1
    wfc4 = jnp.transpose(wfc.reshape(128, 64, 3, 3), (0, 2, 3, 1))   # (128,3,3,64)
    w1 = wfc4.reshape(128, 3 * 3 * 64).T                             # (576, 128)
    p['fc1'] = dict(w=w1.astype(jnp.bfloat16),
                    p=jnp.stack([bfc, jnp.full((128,), 0.25, jnp.float32)]
                                ).astype(jnp.float32))

    # out1 (1) and out2 (4) concatenated into one lane-dense (128, 128) head.
    w_conf = jax.random.normal(nxt(), (1, 128), jnp.float32) * 0.1
    b_conf = jax.random.normal(nxt(), (1,), jnp.float32) * 0.1
    w_off = jax.random.normal(nxt(), (4, 128), jnp.float32) * 0.1
    b_off = jax.random.normal(nxt(), (4,), jnp.float32) * 0.1
    wh = jnp.pad(jnp.concatenate([w_conf.T, w_off.T], axis=1), ((0, 0), (0, LANE - 5)))
    bh = jnp.pad(jnp.concatenate([b_conf, b_off]), (0, LANE - 5)).reshape(1, LANE)
    p['heads'] = dict(w=wh.astype(jnp.bfloat16), b=bh.astype(jnp.float32))
    return p


def rnet_forward(x_nchw, p):
    # Public interface NCHW (PyTorch); convert once, then stay channels-last.
    # Activations are sliced back to their REAL channel count before every
    # im2col so the GEMM K axes stay slim (padded output lanes are exact zeros).
    N = x_nchw.shape[0]
    x = jnp.transpose(x_nchw, (0, 2, 3, 1))                # NHWC
    y = conv_block(x, p['c1a'], 3, 1, 1)                   # (N,24,24,128) [28 real]
    y = conv_block(y[..., :28], p['c1b'], 3, 2, 0)         # (N,11,11,128) [28 real]
    y = conv_block(y[..., :28], p['c2a'], 3, 1, 0)         # (N, 9, 9,128) [48 real]
    y = maxpool_3x3_s2(y)                                  # (N, 4, 4,128)
    y = conv_block(y[..., :48], p['c3'], 2, 1, 0)          # (N, 3, 3,128) [64 real]
    feat = y[..., :64].reshape(N, 3 * 3 * 64)              # (N, 576), (h,w,c) order
    conf, off = fc1_heads(feat, p['fc1'], p['heads'])
    return conf, off


if __name__ == "__main__":
    key = jax.random.PRNGKey(0)
    kx, kp = jax.random.split(key)
    # RNet's flatten (64*3*3) implies a 24x24 input; small batch = 2.
    x = jax.random.normal(kx, (2, 3, 24, 24), jnp.float32)
    params = init_params(kp)
    fwd = jax.jit(rnet_forward)
    conf, off = fwd(x, params)
    jax.block_until_ready((conf, off))
    assert conf.shape == (2, 1) and off.shape == (2, 4)
    assert bool(jnp.all((conf >= 0) & (conf <= 1)))
    assert bool(jnp.all(jnp.isfinite(off)))
    print("KERNEL_OK")
</pallas_src>

<mosaic_0001>
module attributes {stable_mosaic.version = 11 : i64} {
  func.func @gemm_shift_prelu_kernel(%arg0: i32, %arg1: memref<576x32xbf16, #tpu.memory_space<vmem>>, %arg2: memref<32x128xbf16, #tpu.memory_space<vmem>>, %arg3: memref<2x128xf32, #tpu.memory_space<vmem>>, %arg4: memref<576x128xbf16, #tpu.memory_space<vmem>>) attributes {dimension_semantics = [#tpu.dimension_semantics<parallel>], iteration_bounds = array<i64: 2>, scalar_prefetch = 0 : i64, scratch_operands = 0 : i64, tpu.core_type = #tpu.core_type<tc>, window_params = [{transform_indices = @transform_0, window_bounds = array<i64: 576, 32>}, {pipeline_mode = #tpu.pipeline_mode<synchronous>, transform_indices = @transform_1, window_bounds = array<i64: 32, 128>}, {pipeline_mode = #tpu.pipeline_mode<synchronous>, transform_indices = @transform_2, window_bounds = array<i64: 2, 128>}, {transform_indices = @transform_3, window_bounds = array<i64: 576, 128>}]} {
    %c0 = arith.constant 0 : index
    %c0_0 = arith.constant 0 : index
    %0 = vector.load %arg1[%c0, %c0_0] : memref<576x32xbf16, #tpu.memory_space<vmem>>, vector<576x32xbf16>
    %c0_1 = arith.constant 0 : index
    %c0_2 = arith.constant 0 : index
    %1 = vector.load %arg2[%c0_1, %c0_2] : memref<32x128xbf16, #tpu.memory_space<vmem>>, vector<32x128xbf16>
    %cst = arith.constant dense<0.000000e+00> : vector<576x128xf32>
    %2 = tpu.matmul %0, %1, %cst {dimension_numbers = #tpu.dot_dimension_numbers<[1], [0], [0], [1], [0, 0, 1, 1], [], []>} : vector<576x32xbf16>, vector<32x128xbf16>, vector<576x128xf32> -> vector<576x128xf32>
    %c0_3 = arith.constant 0 : index
    %c0_4 = arith.constant 0 : index
    %3 = vector.load %arg3[%c0_3, %c0_4] : memref<2x128xf32, #tpu.memory_space<vmem>>, vector<1x128xf32>
    %4 = vector.broadcast %3 : vector<1x128xf32> to vector<576x128xf32>
    %5 = arith.addf %2, %4 : vector<576x128xf32>
    %cst_5 = arith.constant 0.000000e+00 : f32
    %6 = vector.broadcast %cst_5 : f32 to vector<576x128xf32>
    %7 = arith.cmpf ogt, %5, %6 : vector<576x128xf32>
    %c1 = arith.constant 1 : index
    %c0_6 = arith.constant 0 : index
    %8 = vector.load %arg3[%c1, %c0_6] : memref<2x128xf32, #tpu.memory_space<vmem>>, vector<1x128xf32>
    %9 = vector.broadcast %8 : vector<1x128xf32> to vector<576x128xf32>
    %10 = arith.mulf %9, %5 : vector<576x128xf32>
    %11 = arith.select %7, %5, %10 : vector<576x128xi1>, vector<576x128xf32>
    %12 = arith.truncf %11 : vector<576x128xf32> to vector<576x128xbf16>
    %c0_7 = arith.constant 0 : index
    %c0_8 = arith.constant 0 : index
    %13 = vector.load %arg4[%c0_7, %c0_8] : memref<576x128xbf16, #tpu.memory_space<vmem>>, vector<576x128xbf16>
    tpu.vector_store %arg4[%c0_7, %c0_8], %12 {strides = array<i32>} : memref<576x128xbf16, #tpu.memory_space<vmem>>, vector<576x128xbf16>,
    return
  }
  func.func @transform_0(%arg0: i32) -> (i32, i32) {
    %c0_i32 = arith.constant 0 : i32
    %c0_i32_0 = arith.constant 0 : i32
    return %arg0, %c0_i32 : i32, i32
  }
  func.func @transform_1(%arg0: i32) -> (i32, i32) {
    %c0_i32 = arith.constant 0 : i32
    %c0_i32_0 = arith.constant 0 : i32
    %c0_i32_1 = arith.constant 0 : i32
    return %c0_i32, %c0_i32_0 : i32, i32
  }
  func.func @transform_2(%arg0: i32) -> (i32, i32) {
    %c0_i32 = arith.constant 0 : i32
    %c0_i32_0 = arith.constant 0 : i32
    %c0_i32_1 = arith.constant 0 : i32
    return %c0_i32, %c0_i32_0 : i32, i32
  }
  func.func @transform_3(%arg0: i32) -> (i32, i32) {
    %c0_i32 = arith.constant 0 : i32
    %c0_i32_0 = arith.constant 0 : i32
    return %arg0, %c0_i32 : i32, i32
  }
}

module attributes {stable_mosaic.version = 11 : i64} {
  func.func @gemm_shift_prelu_kernel(%arg0: i32, %arg1: memref<128x256xbf16, #tpu.memory_space<vmem>>, %arg2: memref<256x128xbf16, #tpu.memory_space<vmem>>, %arg3: memref<2x128xf32, #tpu.memory_space<vmem>>, %arg4: memref<128x128xbf16, #tpu.memory_space<vmem>>) attributes {dimension_semantics = [#tpu.dimension_semantics<parallel>], iteration_bounds = array<i64: 2>, scalar_prefetch = 0 : i64, scratch_operands = 0 : i64, tpu.core_type = #tpu.core_type<tc>, window_params = [{transform_indices = @transform_0, window_bounds = array<i64: 128, 256>}, {pipeline_mode = #tpu.pipeline_mode<synchronous>, transform_indices = @transform_1, window_bounds = array<i64: 256, 128>}, {pipeline_mode = #tpu.pipeline_mode<synchronous>, transform_indices = @transform_2, window_bounds = array<i64: 2, 128>}, {transform_indices = @transform_3, window_bounds = array<i64: 128, 128>}]} {
    %c0 = arith.constant 0 : index
    %c0_0 = arith.constant 0 : index
    %0 = vector.load %arg1[%c0, %c0_0] : memref<128x256xbf16, #tpu.memory_space<vmem>>, vector<128x256xbf16>
    %c0_1 = arith.constant 0 : index
    %c0_2 = arith.constant 0 : index
    %1 = vector.load %arg2[%c0_1, %c0_2] : memref<256x128xbf16, #tpu.memory_space<vmem>>, vector<256x128xbf16>
    %cst = arith.constant dense<0.000000e+00> : vector<128x128xf32>
    %2 = tpu.matmul %0, %1, %cst {dimension_numbers = #tpu.dot_dimension_numbers<[1], [0], [0], [1], [0, 0, 1, 1], [], []>} : vector<128x256xbf16>, vector<256x128xbf16>, vector<128x128xf32> -> vector<128x128xf32>
    %c0_3 = arith.constant 0 : index
    %c0_4 = arith.constant 0 : index
    %3 = vector.load %arg3[%c0_3, %c0_4] : memref<2x128xf32, #tpu.memory_space<vmem>>, vector<1x128xf32>
    %4 = vector.broadcast %3 : vector<1x128xf32> to vector<128x128xf32>
    %5 = arith.addf %2, %4 : vector<128x128xf32>
    %cst_5 = arith.constant 0.000000e+00 : f32
    %6 = vector.broadcast %cst_5 : f32 to vector<128x128xf32>
    %7 = arith.cmpf ogt, %5, %6 : vector<128x128xf32>
    %c1 = arith.constant 1 : index
    %c0_6 = arith.constant 0 : index
    %8 = vector.load %arg3[%c1, %c0_6] : memref<2x128xf32, #tpu.memory_space<vmem>>, vector<1x128xf32>
    %9 = vector.broadcast %8 : vector<1x128xf32> to vector<128x128xf32>
    %10 = arith.mulf %9, %5 : vector<128x128xf32>
    %11 = arith.select %7, %5, %10 : vector<128x128xi1>, vector<128x128xf32>
    %12 = arith.truncf %11 : vector<128x128xf32> to vector<128x128xbf16>
    %c0_7 = arith.constant 0 : index
    %c0_8 = arith.constant 0 : index
    %13 = vector.load %arg4[%c0_7, %c0_8] : memref<128x128xbf16, #tpu.memory_space<vmem>>, vector<128x128xbf16>
    tpu.vector_store %arg4[%c0_7, %c0_8], %12 {strides = array<i32>} : memref<128x128xbf16, #tpu.memory_space<vmem>>, vector<128x128xbf16>,
    return
  }
  func.func @transform_0(%arg0: i32) -> (i32, i32) {
    %c0_i32 = arith.constant 0 : i32
    %c0_i32_0 = arith.constant 0 : i32
    return %arg0, %c0_i32 : i32, i32
  }
  func.func @transform_1(%arg0: i32) -> (i32, i32) {
    %c0_i32 = arith.constant 0 : i32
    %c0_i32_0 = arith.constant 0 : i32
    %c0_i32_1 = arith.constant 0 : i32
    return %c0_i32, %c0_i32_0 : i32, i32
  }
  func.func @transform_2(%arg0: i32) -> (i32, i32) {
    %c0_i32 = arith.constant 0 : i32
    %c0_i32_0 = arith.constant 0 : i32
    %c0_i32_1 = arith.constant 0 : i32
    return %c0_i32, %c0_i32_0 : i32, i32
  }
  func.func @transform_3(%arg0: i32) -> (i32, i32) {
    %c0_i32 = arith.constant 0 : i32
    %c0_i32_0 = arith.constant 0 : i32
    return %arg0, %c0_i32 : i32, i32
  }
}

module attributes {stable_mosaic.version = 11 : i64} {
  func.func @gemm_shift_prelu_kernel(%arg0: i32, %arg1: memref<96x256xbf16, #tpu.memory_space<vmem>>, %arg2: memref<256x128xbf16, #tpu.memory_space<vmem>>, %arg3: memref<2x128xf32, #tpu.memory_space<vmem>>, %arg4: memref<96x128xbf16, #tpu.memory_space<vmem>>) attributes {dimension_semantics = [#tpu.dimension_semantics<parallel>], iteration_bounds = array<i64: 2>, scalar_prefetch = 0 : i64, scratch_operands = 0 : i64, tpu.core_type = #tpu.core_type<tc>, window_params = [{transform_indices = @transform_0, window_bounds = array<i64: 96, 256>}, {pipeline_mode = #tpu.pipeline_mode<synchronous>, transform_indices = @transform_1, window_bounds = array<i64: 256, 128>}, {pipeline_mode = #tpu.pipeline_mode<synchronous>, transform_indices = @transform_2, window_bounds = array<i64: 2, 128>}, {transform_indices = @transform_3, window_bounds = array<i64: 96, 128>}]} {
    %c0 = arith.constant 0 : index
    %c0_0 = arith.constant 0 : index
    %0 = vector.load %arg1[%c0, %c0_0] : memref<96x256xbf16, #tpu.memory_space<vmem>>, vector<96x256xbf16>
    %c0_1 = arith.constant 0 : index
    %c0_2 = arith.constant 0 : index
    %1 = vector.load %arg2[%c0_1, %c0_2] : memref<256x128xbf16, #tpu.memory_space<vmem>>, vector<256x128xbf16>
    %cst = arith.constant dense<0.000000e+00> : vector<96x128xf32>
    %2 = tpu.matmul %0, %1, %cst {dimension_numbers = #tpu.dot_dimension_numbers<[1], [0], [0], [1], [0, 0, 1, 1], [], []>} : vector<96x256xbf16>, vector<256x128xbf16>, vector<96x128xf32> -> vector<96x128xf32>
    %c0_3 = arith.constant 0 : index
    %c0_4 = arith.constant 0 : index
    %3 = vector.load %arg3[%c0_3, %c0_4] : memref<2x128xf32, #tpu.memory_space<vmem>>, vector<1x128xf32>
    %4 = vector.broadcast %3 : vector<1x128xf32> to vector<96x128xf32>
    %5 = arith.addf %2, %4 : vector<96x128xf32>
    %cst_5 = arith.constant 0.000000e+00 : f32
    %6 = vector.broadcast %cst_5 : f32 to vector<96x128xf32>
    %7 = arith.cmpf ogt, %5, %6 : vector<96x128xf32>
    %c1 = arith.constant 1 : index
    %c0_6 = arith.constant 0 : index
    %8 = vector.load %arg3[%c1, %c0_6] : memref<2x128xf32, #tpu.memory_space<vmem>>, vector<1x128xf32>
    %9 = vector.broadcast %8 : vector<1x128xf32> to vector<96x128xf32>
    %10 = arith.mulf %9, %5 : vector<96x128xf32>
    %11 = arith.select %7, %5, %10 : vector<96x128xi1>, vector<96x128xf32>
    %12 = arith.truncf %11 : vector<96x128xf32> to vector<96x128xbf16>
    %c0_7 = arith.constant 0 : index
    %c0_8 = arith.constant 0 : index
    %13 = vector.load %arg4[%c0_7, %c0_8] : memref<96x128xbf16, #tpu.memory_space<vmem>>, vector<96x128xbf16>
    tpu.vector_store %arg4[%c0_7, %c0_8], %12 {strides = array<i32>} : memref<96x128xbf16, #tpu.memory_space<vmem>>, vector<96x128xbf16>,
    return
  }
  func.func @transform_0(%arg0: i32) -> (i32, i32) {
    %c0_i32 = arith.constant 0 : i32
    %c0_i32_0 = arith.constant 0 : i32
    return %arg0, %c0_i32 : i32, i32
  }
  func.func @transform_1(%arg0: i32) -> (i32, i32) {
    %c0_i32 = arith.constant 0 : i32
    %c0_i32_0 = arith.constant 0 : i32
    %c0_i32_1 = arith.constant 0 : i32
    return %c0_i32, %c0_i32_0 : i32, i32
  }
  func.func @transform_2(%arg0: i32) -> (i32, i32) {
    %c0_i32 = arith.constant 0 : i32
    %c0_i32_0 = arith.constant 0 : i32
    %c0_i32_1 = arith.constant 0 : i32
    return %c0_i32, %c0_i32_0 : i32, i32
  }
  func.func @transform_3(%arg0: i32) -> (i32, i32) {
    %c0_i32 = arith.constant 0 : i32
    %c0_i32_0 = arith.constant 0 : i32
    return %arg0, %c0_i32 : i32, i32
  }
}

module attributes {stable_mosaic.version = 11 : i64} {
  func.func @maxpool9_kernel(%arg0: i32, %arg1: memref<9x16x128xbf16, #tpu.memory_space<vmem>>, %arg2: memref<16x128xbf16, #tpu.memory_space<vmem>>) attributes {dimension_semantics = [#tpu.dimension_semantics<parallel>], iteration_bounds = array<i64: 2>, scalar_prefetch = 0 : i64, scratch_operands = 0 : i64, tpu.core_type = #tpu.core_type<tc>, window_params = [{transform_indices = @transform_0, window_bounds = array<i64: 9, 16, 128>}, {transform_indices = @transform_1, window_bounds = array<i64: 16, 128>}]} {
    %c0 = arith.constant 0 : index
    %c0_0 = arith.constant 0 : index
    %c0_1 = arith.constant 0 : index
    %0 = vector.load %arg1[%c0, %c0_0, %c0_1] : memref<9x16x128xbf16, #tpu.memory_space<vmem>>, vector<1x16x128xbf16>
    %1 = vector.shape_cast %0 : vector<1x16x128xbf16> to vector<16x128xbf16>
    %c1 = arith.constant 1 : index
    %c0_2 = arith.constant 0 : index
    %c0_3 = arith.constant 0 : index
    %2 = vector.load %arg1[%c1, %c0_2, %c0_3] : memref<9x16x128xbf16, #tpu.memory_space<vmem>>, vector<1x16x128xbf16>
    %3 = vector.shape_cast %2 : vector<1x16x128xbf16> to vector<16x128xbf16>
    %4 = arith.maximumf %1, %3 : vector<16x128xbf16>
    %c2 = arith.constant 2 : index
    %c0_4 = arith.constant 0 : index
    %c0_5 = arith.constant 0 : index
    %5 = vector.load %arg1[%c2, %c0_4, %c0_5] : memref<9x16x128xbf16, #tpu.memory_space<vmem>>, vector<1x16x128xbf16>
    %6 = vector.shape_cast %5 : vector<1x16x128xbf16> to vector<16x128xbf16>
    %7 = arith.maximumf %4, %6 : vector<16x128xbf16>
    %c3 = arith.constant 3 : index
    %c0_6 = arith.constant 0 : index
    %c0_7 = arith.constant 0 : index
    %8 = vector.load %arg1[%c3, %c0_6, %c0_7] : memref<9x16x128xbf16, #tpu.memory_space<vmem>>, vector<1x16x128xbf16>
    %9 = vector.shape_cast %8 : vector<1x16x128xbf16> to vector<16x128xbf16>
    %10 = arith.maximumf %7, %9 : vector<16x128xbf16>
    %c4 = arith.constant 4 : index
    %c0_8 = arith.constant 0 : index
    %c0_9 = arith.constant 0 : index
    %11 = vector.load %arg1[%c4, %c0_8, %c0_9] : memref<9x16x128xbf16, #tpu.memory_space<vmem>>, vector<1x16x128xbf16>
    %12 = vector.shape_cast %11 : vector<1x16x128xbf16> to vector<16x128xbf16>
    %13 = arith.maximumf %10, %12 : vector<16x128xbf16>
    %c5 = arith.constant 5 : index
    %c0_10 = arith.constant 0 : index
    %c0_11 = arith.constant 0 : index
    %14 = vector.load %arg1[%c5, %c0_10, %c0_11] : memref<9x16x128xbf16, #tpu.memory_space<vmem>>, vector<1x16x128xbf16>
    %15 = vector.shape_cast %14 : vector<1x16x128xbf16> to vector<16x128xbf16>
    %16 = arith.maximumf %13, %15 : vector<16x128xbf16>
    %c6 = arith.constant 6 : index
    %c0_12 = arith.constant 0 : index
    %c0_13 = arith.constant 0 : index
    %17 = vector.load %arg1[%c6, %c0_12, %c0_13] : memref<9x16x128xbf16, #tpu.memory_space<vmem>>, vector<1x16x128xbf16>
    %18 = vector.shape_cast %17 : vector<1x16x128xbf16> to vector<16x128xbf16>
    %19 = arith.maximumf %16, %18 : vector<16x128xbf16>
    %c7 = arith.constant 7 : index
    %c0_14 = arith.constant 0 : index
    %c0_15 = arith.constant 0 : index
    %20 = vector.load %arg1[%c7, %c0_14, %c0_15] : memref<9x16x128xbf16, #tpu.memory_space<vmem>>, vector<1x16x128xbf16>
    %21 = vector.shape_cast %20 : vector<1x16x128xbf16> to vector<16x128xbf16>
    %22 = arith.maximumf %19, %21 : vector<16x128xbf16>
    %c8 = arith.constant 8 : index
    %c0_16 = arith.constant 0 : index
    %c0_17 = arith.constant 0 : index
    %23 = vector.load %arg1[%c8, %c0_16, %c0_17] : memref<9x16x128xbf16, #tpu.memory_space<vmem>>, vector<1x16x128xbf16>
    %24 = vector.shape_cast %23 : vector<1x16x128xbf16> to vector<16x128xbf16>
    %25 = arith.maximumf %22, %24 : vector<16x128xbf16>
    %c0_18 = arith.constant 0 : index
    %c0_19 = arith.constant 0 : index
    %26 = vector.load %arg2[%c0_18, %c0_19] : memref<16x128xbf16, #tpu.memory_space<vmem>>, vector<16x128xbf16>
    tpu.vector_store %arg2[%c0_18, %c0_19], %25 {strides = array<i32>} : memref<16x128xbf16, #tpu.memory_space<vmem>>, vector<16x128xbf16>,
    return
  }
  func.func @transform_0(%arg0: i32) -> (i32, i32, i32) {
    %c0_i32 = arith.constant 0 : i32
    %c0_i32_0 = arith.constant 0 : i32
    %c0_i32_1 = arith.constant 0 : i32
    return %c0_i32, %arg0, %c0_i32_0 : i32, i32, i32
  }
  func.func @transform_1(%arg0: i32) -> (i32, i32) {
    %c0_i32 = arith.constant 0 : i32
    %c0_i32_0 = arith.constant 0 : i32
    return %arg0, %c0_i32 : i32, i32
  }
}

module attributes {stable_mosaic.version = 11 : i64} {
  func.func @gemm_shift_prelu_kernel(%arg0: i32, %arg1: memref<16x192xbf16, #tpu.memory_space<vmem>>, %arg2: memref<192x128xbf16, #tpu.memory_space<vmem>>, %arg3: memref<2x128xf32, #tpu.memory_space<vmem>>, %arg4: memref<16x128xbf16, #tpu.memory_space<vmem>>) attributes {dimension_semantics = [#tpu.dimension_semantics<parallel>], iteration_bounds = array<i64: 2>, scalar_prefetch = 0 : i64, scratch_operands = 0 : i64, tpu.core_type = #tpu.core_type<tc>, window_params = [{transform_indices = @transform_0, window_bounds = array<i64: 16, 192>}, {pipeline_mode = #tpu.pipeline_mode<synchronous>, transform_indices = @transform_1, window_bounds = array<i64: 192, 128>}, {pipeline_mode = #tpu.pipeline_mode<synchronous>, transform_indices = @transform_2, window_bounds = array<i64: 2, 128>}, {transform_indices = @transform_3, window_bounds = array<i64: 16, 128>}]} {
    %c0 = arith.constant 0 : index
    %c0_0 = arith.constant 0 : index
    %0 = vector.load %arg1[%c0, %c0_0] : memref<16x192xbf16, #tpu.memory_space<vmem>>, vector<16x192xbf16>
    %c0_1 = arith.constant 0 : index
    %c0_2 = arith.constant 0 : index
    %1 = vector.load %arg2[%c0_1, %c0_2] : memref<192x128xbf16, #tpu.memory_space<vmem>>, vector<192x128xbf16>
    %cst = arith.constant dense<0.000000e+00> : vector<16x128xf32>
    %2 = tpu.matmul %0, %1, %cst {dimension_numbers = #tpu.dot_dimension_numbers<[1], [0], [0], [1], [0, 0, 1, 1], [], []>} : vector<16x192xbf16>, vector<192x128xbf16>, vector<16x128xf32> -> vector<16x128xf32>
    %c0_3 = arith.constant 0 : index
    %c0_4 = arith.constant 0 : index
    %3 = vector.load %arg3[%c0_3, %c0_4] : memref<2x128xf32, #tpu.memory_space<vmem>>, vector<1x128xf32>
    %4 = vector.broadcast %3 : vector<1x128xf32> to vector<16x128xf32>
    %5 = arith.addf %2, %4 : vector<16x128xf32>
    %cst_5 = arith.constant 0.000000e+00 : f32
    %6 = vector.broadcast %cst_5 : f32 to vector<16x128xf32>
    %7 = arith.cmpf ogt, %5, %6 : vector<16x128xf32>
    %c1 = arith.constant 1 : index
    %c0_6 = arith.constant 0 : index
    %8 = vector.load %arg3[%c1, %c0_6] : memref<2x128xf32, #tpu.memory_space<vmem>>, vector<1x128xf32>
    %9 = vector.broadcast %8 : vector<1x128xf32> to vector<16x128xf32>
    %10 = arith.mulf %9, %5 : vector<16x128xf32>
    %11 = arith.select %7, %5, %10 : vector<16x128xi1>, vector<16x128xf32>
    %12 = arith.truncf %11 : vector<16x128xf32> to vector<16x128xbf16>
    %c0_7 = arith.constant 0 : index
    %c0_8 = arith.constant 0 : index
    %13 = vector.load %arg4[%c0_7, %c0_8] : memref<16x128xbf16, #tpu.memory_space<vmem>>, vector<16x128xbf16>
    tpu.vector_store %arg4[%c0_7, %c0_8], %12 {strides = array<i32>} : memref<16x128xbf16, #tpu.memory_space<vmem>>, vector<16x128xbf16>,
    return
  }
  func.func @transform_0(%arg0: i32) -> (i32, i32) {
    %c0_i32 = arith.constant 0 : i32
    %c0_i32_0 = arith.constant 0 : i32
    return %arg0, %c0_i32 : i32, i32
  }
  func.func @transform_1(%arg0: i32) -> (i32, i32) {
    %c0_i32 = arith.constant 0 : i32
    %c0_i32_0 = arith.constant 0 : i32
    %c0_i32_1 = arith.constant 0 : i32
    return %c0_i32, %c0_i32_0 : i32, i32
  }
  func.func @transform_2(%arg0: i32) -> (i32, i32) {
    %c0_i32 = arith.constant 0 : i32
    %c0_i32_0 = arith.constant 0 : i32
    %c0_i32_1 = arith.constant 0 : i32
    return %c0_i32, %c0_i32_0 : i32, i32
  }
  func.func @transform_3(%arg0: i32) -> (i32, i32) {
    %c0_i32 = arith.constant 0 : i32
    %c0_i32_0 = arith.constant 0 : i32
    return %arg0, %c0_i32 : i32, i32
  }
}

module attributes {stable_mosaic.version = 11 : i64} {
  func.func @fc_heads_kernel(%arg0: i32, %arg1: memref<2x576xbf16, #tpu.memory_space<vmem>>, %arg2: memref<576x128xbf16, #tpu.memory_space<vmem>>, %arg3: memref<2x128xf32, #tpu.memory_space<vmem>>, %arg4: memref<128x128xbf16, #tpu.memory_space<vmem>>, %arg5: memref<1x128xf32, #tpu.memory_space<vmem>>, %arg6: memref<2x128xf32, #tpu.memory_space<vmem>>) attributes {dimension_semantics = [#tpu.dimension_semantics<parallel>], iteration_bounds = array<i64: 1>, scalar_prefetch = 0 : i64, scratch_operands = 0 : i64, tpu.core_type = #tpu.core_type<tc>, window_params = [{transform_indices = @transform_0, window_bounds = array<i64: 2, 576>}, {pipeline_mode = #tpu.pipeline_mode<synchronous>, transform_indices = @transform_1, window_bounds = array<i64: 576, 128>}, {pipeline_mode = #tpu.pipeline_mode<synchronous>, transform_indices = @transform_2, window_bounds = array<i64: 2, 128>}, {pipeline_mode = #tpu.pipeline_mode<synchronous>, transform_indices = @transform_3, window_bounds = array<i64: 128, 128>}, {pipeline_mode = #tpu.pipeline_mode<synchronous>, transform_indices = @transform_4, window_bounds = array<i64: 1, 128>}, {transform_indices = @transform_5, window_bounds = array<i64: 2, 128>}]} {
    %c0 = arith.constant 0 : index
    %c0_0 = arith.constant 0 : index
    %0 = vector.load %arg1[%c0, %c0_0] : memref<2x576xbf16, #tpu.memory_space<vmem>>, vector<2x576xbf16>
    %c0_1 = arith.constant 0 : index
    %c0_2 = arith.constant 0 : index
    %1 = vector.load %arg2[%c0_1, %c0_2] : memref<576x128xbf16, #tpu.memory_space<vmem>>, vector<576x128xbf16>
    %cst = arith.constant dense<0.000000e+00> : vector<2x128xf32>
    %2 = tpu.matmul %0, %1, %cst {dimension_numbers = #tpu.dot_dimension_numbers<[1], [0], [0], [1], [0, 0, 1, 1], [], []>} : vector<2x576xbf16>, vector<576x128xbf16>, vector<2x128xf32> -> vector<2x128xf32>
    %c0_3 = arith.constant 0 : index
    %c0_4 = arith.constant 0 : index
    %3 = vector.load %arg3[%c0_3, %c0_4] : memref<2x128xf32, #tpu.memory_space<vmem>>, vector<1x128xf32>
    %4 = vector.broadcast %3 : vector<1x128xf32> to vector<2x128xf32>
    %5 = arith.addf %2, %4 : vector<2x128xf32>
    %cst_5 = arith.constant 0.000000e+00 : f32
    %6 = vector.broadcast %cst_5 : f32 to vector<2x128xf32>
    %7 = arith.cmpf ogt, %5, %6 : vector<2x128xf32>
    %c1 = arith.constant 1 : index
    %c0_6 = arith.constant 0 : index
    %8 = vector.load %arg3[%c1, %c0_6] : memref<2x128xf32, #tpu.memory_space<vmem>>, vector<1x128xf32>
    %9 = vector.broadcast %8 : vector<1x128xf32> to vector<2x128xf32>
    %10 = arith.mulf %9, %5 : vector<2x128xf32>
    %11 = arith.select %7, %5, %10 : vector<2x128xi1>, vector<2x128xf32>
    %12 = arith.truncf %11 : vector<2x128xf32> to vector<2x128xbf16>
    %c0_7 = arith.constant 0 : index
    %c0_8 = arith.constant 0 : index
    %13 = vector.load %arg4[%c0_7, %c0_8] : memref<128x128xbf16, #tpu.memory_space<vmem>>, vector<128x128xbf16>
    %cst_9 = arith.constant dense<0.000000e+00> : vector<2x128xf32>
    %14 = tpu.matmul %12, %13, %cst_9 {dimension_numbers = #tpu.dot_dimension_numbers<[1], [0], [0], [1], [0, 0, 1, 1], [], []>} : vector<2x128xbf16>, vector<128x128xbf16>, vector<2x128xf32> -> vector<2x128xf32>
    %c0_10 = arith.constant 0 : index
    %c0_11 = arith.constant 0 : index
    %15 = vector.load %arg5[%c0_10, %c0_11] : memref<1x128xf32, #tpu.memory_space<vmem>>, vector<1x128xf32>
    %16 = vector.broadcast %15 : vector<1x128xf32> to vector<2x128xf32>
    %17 = arith.addf %14, %16 : vector<2x128xf32>
    %18 = tpu.iota {dimensions = array<i32: 1>} : vector<2x128xi32>
    %c0_i32 = arith.constant 0 : i32
    %19 = vector.broadcast %c0_i32 : i32 to vector<2x128xi32>
    %20 = arith.cmpi eq, %18, %19 : vector<2x128xi32>
    %21 = arith.negf %17 : vector<2x128xf32>
    %22 = math.exp %21 : vector<2x128xf32>
    %cst_12 = arith.constant 1.000000e+00 : f32
    %23 = vector.broadcast %cst_12 : f32 to vector<2x128xf32>
    %24 = arith.addf %23, %22 : vector<2x128xf32>
    %25 = arith.divf %23, %24 : vector<2x128xf32>
    %26 = arith.select %20, %25, %17 : vector<2x128xi1>, vector<2x128xf32>
    %c0_13 = arith.constant 0 : index
    %c0_14 = arith.constant 0 : index
    %27 = vector.load %arg6[%c0_13, %c0_14] : memref<2x128xf32, #tpu.memory_space<vmem>>, vector<2x128xf32>
    tpu.vector_store %arg6[%c0_13, %c0_14], %26 {strides = array<i32>} : memref<2x128xf32, #tpu.memory_space<vmem>>, vector<2x128xf32>,
    return
  }
  func.func @transform_0(%arg0: i32) -> (i32, i32) {
    %c0_i32 = arith.constant 0 : i32
    %c0_i32_0 = arith.constant 0 : i32
    return %arg0, %c0_i32 : i32, i32
  }
  func.func @transform_1(%arg0: i32) -> (i32, i32) {
    %c0_i32 = arith.constant 0 : i32
    %c0_i32_0 = arith.constant 0 : i32
    %c0_i32_1 = arith.constant 0 : i32
    return %c0_i32, %c0_i32_0 : i32, i32
  }
  func.func @transform_2(%arg0: i32) -> (i32, i32) {
    %c0_i32 = arith.constant 0 : i32
    %c0_i32_0 = arith.constant 0 : i32
    %c0_i32_1 = arith.constant 0 : i32
    return %c0_i32, %c0_i32_0 : i32, i32
  }
  func.func @transform_3(%arg0: i32) -> (i32, i32) {
    %c0_i32 = arith.constant 0 : i32
    %c0_i32_0 = arith.constant 0 : i32
    %c0_i32_1 = arith.constant 0 : i32
    return %c0_i32, %c0_i32_0 : i32, i32
  }
  func.func @transform_4(%arg0: i32) -> (i32, i32) {
    %c0_i32 = arith.constant 0 : i32
    %c0_i32_0 = arith.constant 0 : i32
    %c0_i32_1 = arith.constant 0 : i32
    return %c0_i32, %c0_i32_0 : i32, i32
  }
  func.func @transform_5(%arg0: i32) -> (i32, i32) {
    %c0_i32 = arith.constant 0 : i32
    %c0_i32_0 = arith.constant 0 : i32
    return %arg0, %c0_i32 : i32, i32
  }
}

</mosaic_0001>

<bundles_post_ra>
// kernel: rnet_forward.6
= control target key start
LH: loop header
LB: loop body
LE: loop exit
PB: predicated region body
PF: predicated region fallthrough
CT: control target
= control target key end

     0   :  { %s1655_s12 = smov 0   ;;  %s1951_s0 = inlined_call_operand.vmem [shape: bf16[1152,32], index: 0, kind: input, shape index: {}]   ;;  %s1952_s1 = inlined_call_operand.vmem [shape: bf16[32,128], index: 1, kind: input, shape index: {}]   ;;  %s1953_s2 = inlined_call_operand.vmem [shape: f32[2,128], index: 2, kind: input, shape index: {}]   ;;  %s1954_s3 = inlined_call_operand.vmem [shape: bf16[1152,128], index: 3, kind: output, shape index: {}]  }
   0x1 LB: > { %s1161_s13 = sadd.s32 4294967295, %s1633_s12   ;;  %p1165_p0 = scmp.ge.s32.totalorder %s1633_s12, 1  ;;  %s1633_s12 = sphi %s1655_s12, %s13_s12  }
   0x2   : > { %p138_p1 = scmp.lt.s32.totalorder %s1633_s12, 3 }
   0x4   : > { %p139_p2 = pnand %p1165_p0, %p138_p1 }
   0x5   : > { %s162_s16 = smul.u32 (!%p139_p2), 72, %s1161_s13 }
   0x6   : > { %142 = sbr.rel (%p139_p2) target bundleno = 297 (0x129), region = 32 }
   0x7   : > { %p163_p3 = scmp.lt.s32.totalorder (!%p139_p2), %s162_s16, 143 }
   0xb   : > { %v1395_v0 = vld [vmem:[%s1952_s1 + $0x8] sm:$0xff]  ;;  %v1394_v1 = vld [vmem:[%s1952_s1] sm:$0xff]  ;;  %s1956_s16 = smov (!%p163_p3, %s162_s16), 143  ;;  %vm445_vm0 = vcmask 261120  }
   0xc   : > { %560 = vmatpush.bf16.msra.mxu0 %v1395_v0  ;;  %1611 = vmatpush.bf16.msra.mxu1 %v1395_v0  ;;  %s1166_s19 = sshll.u32 %s1956_s16, 2  ;;  %v1750_v40 = vld [vmem:[%s1953_s2] ss:$0 sm:$0xff]  ;;  %v1760_v42 = vld [vmem:[%s1953_s2 + $0x1] ss:$0 sm:$0xff] }
   0xd   : > { %1612 = vmatpush.bf16.msra.mxu2 %v1395_v0  ;;  %1613 = vmatpush.bf16.msra.mxu3 %v1395_v0  ;;  %s1677_s22 = scalar_lea.vmem %s1951_s0, %s1166_s19  ;;  %s1776_s29 = scalar_lea.vmem %s1954_s3, %s1166_s19 }
   0xe   : > { %v1358_v2 = vld [vmem:[%s1677_s22] sm:$0xff]  ;;  %v1367_v3 = vld [vmem:[%s1677_s22 + $0x48] sm:$0xff]  ;;  %v1376_v4 = vld [vmem:[%s1677_s22 + $0x90] sm:$0xff] }
   0xf   : > { %v1385_v5 = vld [vmem:[%s1677_s22 + $0xd8] sm:$0xff]  ;;  %v1359_v6 = vld [vmem:[%s1677_s22 + $0x8] sm:$0xff]  ;;  %v1368_v7 = vld [vmem:[%s1677_s22 + $0x50] sm:$0xff] }
  0x10   : > { %561 = vmatpush.bf16.msra.mxu0 %v1394_v1  ;;  %1614 = vmatpush.bf16.msra.mxu1 %v1394_v1  ;;  %v1377_v8 = vld [vmem:[%s1677_s22 + $0x98] sm:$0xff]  ;;  %v1386_v9 = vld [vmem:[%s1677_s22 + $0xe0] sm:$0xff]  ;;  %v1360_v10 = vld [vmem:[%s1677_s22 + $0x10] sm:$0xff] }
  0x11   : > { %1615 = vmatpush.bf16.msra.mxu2 %v1394_v1  ;;  %1616 = vmatpush.bf16.msra.mxu3 %v1394_v1  ;;  %v1369_v11 = vld [vmem:[%s1677_s22 + $0x58] sm:$0xff]  ;;  %v1378_v12 = vld [vmem:[%s1677_s22 + $0xa0] sm:$0xff]  ;;  %v1387_v13 = vld [vmem:[%s1677_s22 + $0xe8] sm:$0xff] }
  0x12   : > { %v1361_v14 = vld [vmem:[%s1677_s22 + $0x18] sm:$0xff]  ;;  %v1370_v15 = vld [vmem:[%s1677_s22 + $0x60] sm:$0xff]  ;;  %v1379_v16 = vld [vmem:[%s1677_s22 + $0xa8] sm:$0xff] }
  0x13   : > { %1320 = vmatmul.msk.bf16.vlgmr.msra.gmra.mxu0 %vm445_vm0, %v1358_v2  ;;  %1329 = vmatmul.msk.bf16.vlgmr.msra.gmra.mxu1 %vm445_vm0, %v1367_v3  ;;  %v1388_v17 = vld [vmem:[%s1677_s22 + $0xf0] sm:$0xff]  ;;  %v1362_v18 = vld [vmem:[%s1677_s22 + $0x20] sm:$0xff]  ;;  %v1371_v19 = vld [vmem:[%s1677_s22 + $0x68] sm:$0xff] }
  0x14   : > { %1338 = vmatmul.msk.bf16.vlgmr.msra.gmra.mxu2 %vm445_vm0, %v1376_v4  ;;  %1347 = vmatmul.msk.bf16.vlgmr.msra.gmra.mxu3 %vm445_vm0, %v1385_v5  ;;  %v1380_v20 = vld [vmem:[%s1677_s22 + $0xb0] sm:$0xff]  ;;  %v1389_v21 = vld [vmem:[%s1677_s22 + $0xf8] sm:$0xff]  ;;  %v1363_v22 = vld [vmem:[%s1677_s22 + $0x28] sm:$0xff] }
  0x15   : > { %v1372_v23 = vld [vmem:[%s1677_s22 + $0x70] sm:$0xff]  ;;  %v1381_v24 = vld [vmem:[%s1677_s22 + $0xb8] sm:$0xff]  ;;  %v1390_v25 = vld [vmem:[%s1677_s22 + $0x100] sm:$0xff] }
  0x16   : > { %v1364_v26 = vld [vmem:[%s1677_s22 + $0x30] sm:$0xff]  ;;  %v1373_v27 = vld [vmem:[%s1677_s22 + $0x78] sm:$0xff]  ;;  %v1382_v28 = vld [vmem:[%s1677_s22 + $0xc0] sm:$0xff] }
  0x17   : > { %v1391_v29 = vld [vmem:[%s1677_s22 + $0x108] sm:$0xff]  ;;  %v1365_v30 = vld [vmem:[%s1677_s22 + $0x38] sm:$0xff]  ;;  %v1374_v31 = vld [vmem:[%s1677_s22 + $0x80] sm:$0xff] }
  0x18   : > { %v1383_v32 = vld [vmem:[%s1677_s22 + $0xc8] sm:$0xff]  ;;  %v1392_v33 = vld [vmem:[%s1677_s22 + $0x110] sm:$0xff]  ;;  %v1366_v34 = vld [vmem:[%s1677_s22 + $0x40] sm:$0xff] }
  0x19   : > { %v1375_v35 = vld [vmem:[%s1677_s22 + $0x88] sm:$0xff]  ;;  %v1384_v38 = vld [vmem:[%s1677_s22 + $0xd0] sm:$0xff]  ;;  %v1393_v39 = vld [vmem:[%s1677_s22 + $0x118] sm:$0xff] }
  0x23   : > { %1321 = vmatmul.msk.bf16.gmra.mxu0 %vm445_vm0, %v1359_v6  ;;  %1330 = vmatmul.msk.bf16.gmra.mxu1 %vm445_vm0, %v1368_v7 }
  0x24   : > { %1339 = vmatmul.msk.bf16.gmra.mxu2 %vm445_vm0, %v1377_v8  ;;  %1348 = vmatmul.msk.bf16.gmra.mxu3 %vm445_vm0, %v1386_v9 }
  0x33   : > { %1322 = vmatmul.msk.bf16.gmra.mxu0 %vm445_vm0, %v1360_v10  ;;  %1331 = vmatmul.msk.bf16.gmra.mxu1 %vm445_vm0, %v1369_v11 }
  0x34   : > { %1340 = vmatmul.msk.bf16.gmra.mxu2 %vm445_vm0, %v1378_v12  ;;  %1349 = vmatmul.msk.bf16.gmra.mxu3 %vm445_vm0, %v1387_v13 }
  0x43   : > { %1323 = vmatmul.msk.bf16.gmra.mxu0 %vm445_vm0, %v1361_v14  ;;  %1332 = vmatmul.msk.bf16.gmra.mxu1 %vm445_vm0, %v1370_v15 }
  0x44   : > { %1341 = vmatmul.msk.bf16.gmra.mxu2 %vm445_vm0, %v1379_v16  ;;  %1350 = vmatmul.msk.bf16.gmra.mxu3 %vm445_vm0, %v1388_v17 }
  0x53   : > { %1324 = vmatmul.msk.bf16.gmra.mxu0 %vm445_vm0, %v1362_v18  ;;  %1333 = vmatmul.msk.bf16.gmra.mxu1 %vm445_vm0, %v1371_v19 }
  0x54   : > { %1342 = vmatmul.msk.bf16.gmra.mxu2 %vm445_vm0, %v1380_v20  ;;  %1351 = vmatmul.msk.bf16.gmra.mxu3 %vm445_vm0, %v1389_v21 }
  0x63   : > { %1325 = vmatmul.msk.bf16.gmra.mxu0 %vm445_vm0, %v1363_v22  ;;  %1334 = vmatmul.msk.bf16.gmra.mxu1 %vm445_vm0, %v1372_v23 }
  0x64   : > { %1343 = vmatmul.msk.bf16.gmra.mxu2 %vm445_vm0, %v1381_v24  ;;  %1352 = vmatmul.msk.bf16.gmra.mxu3 %vm445_vm0, %v1390_v25 }
  0x73   : > { %1326 = vmatmul.msk.bf16.gmra.mxu0 %vm445_vm0, %v1364_v26  ;;  %1335 = vmatmul.msk.bf16.gmra.mxu1 %vm445_vm0, %v1373_v27 }
  0x74   : > { %1344 = vmatmul.msk.bf16.gmra.mxu2 %vm445_vm0, %v1382_v28  ;;  %1353 = vmatmul.msk.bf16.gmra.mxu3 %vm445_vm0, %v1391_v29 }
  0x83   : > { %1327 = vmatmul.msk.bf16.gmra.mxu0 %vm445_vm0, %v1365_v30  ;;  %1336 = vmatmul.msk.bf16.gmra.mxu1 %vm445_vm0, %v1374_v31 }
  0x84   : > { %1345 = vmatmul.msk.bf16.gmra.mxu2 %vm445_vm0, %v1383_v32  ;;  %1354 = vmatmul.msk.bf16.gmra.mxu3 %vm445_vm0, %v1392_v33 }
  0x90   : > { %v563_v36 = vpop.f32.mrf.mxu0  ;;  %v608_v37 = vpop.f32.mrf.mxu1 }
  0x91   : > { %v564_v41 = vadd.f32 %v1750_v40, %v563_v36  ;;  %v609_v43 = vadd.f32 %v1750_v40, %v608_v37 }
  0x93   : > { %1328 = vmatmul.msk.bf16.gmra.mxu0 %vm445_vm0, %v1366_v34  ;;  %1337 = vmatmul.msk.bf16.gmra.mxu1 %vm445_vm0, %v1375_v35  ;;  %v817_v48 = vmul.f32 %v1760_v42, %v564_v41  ;;  %v835_v49 = vmul.f32 %v1760_v42, %v609_v43  ;;  %vm743_vm1 = vcmp.gt.f32.partialorder %v564_v41, 0.0  ;;  %vm761_vm2 = vcmp.gt.f32.partialorder %v609_v43, 0.0 }
  0x94   : > { %1346 = vmatmul.msk.bf16.gmra.mxu2 %vm445_vm0, %v1384_v38  ;;  %1355 = vmatmul.msk.bf16.gmra.mxu3 %vm445_vm0, %v1393_v39 }
  0x95   : > { %v889_v56 = vsel %vm743_vm1, %v564_v41, %v817_v48  ;;  %v907_v57 = vsel %vm761_vm2, %v609_v43, %v835_v49 }
  0x97   : > { %v653_v44 = vpop.f32.mrf.mxu2  ;;  %v698_v45 = vpop.f32.mrf.mxu3 }
  0x98   : > { %v565_v46 = vpop.f32.mrf.mxu0  ;;  %v610_v47 = vpop.f32.mrf.mxu1  ;;  %v654_v54 = vadd.f32 %v1750_v40, %v653_v44  ;;  %v699_v55 = vadd.f32 %v1750_v40, %v698_v45 }
  0x99   : > { %v566_v50 = vadd.f32 %v1750_v40, %v565_v46  ;;  %v611_v51 = vadd.f32 %v1750_v40, %v610_v47 }
  0x9a   : > { %v853_v0 = vmul.f32 %v1760_v42, %v654_v54  ;;  %v871_v1 = vmul.f32 %v1760_v42, %v699_v55  ;;  %vm779_vm5 = vcmp.gt.f32.partialorder %v654_v54, 0.0  ;;  %vm797_vm6 = vcmp.gt.f32.partialorder %v699_v55, 0.0 }
  0x9b   : > { %vm744_vm3 = vcmp.gt.f32.partialorder %v566_v50, 0.0  ;;  %v818_v52 = vmul.f32 %v1760_v42, %v566_v50  ;;  %vm762_vm4 = vcmp.gt.f32.partialorder %v611_v51, 0.0  ;;  %v836_v53 = vmul.f32 %v1760_v42, %v611_v51 }
  0x9c   : > { %v925_v8 = vsel %vm779_vm5, %v654_v54, %v853_v0  ;;  %v943_v9 = vsel %vm797_vm6, %v699_v55, %v871_v1 }
  0x9d   : > { %v890_v58 = vsel %vm744_vm3, %v566_v50, %v818_v52  ;;  %v908_v59 = vsel %vm762_vm4, %v611_v51, %v836_v53 }
  0x9e   : > { %v1399_v60 = vpack.c.bf16 %v890_v58, %v889_v56  ;;  %v1444_v61 = vpack.c.bf16 %v908_v59, %v907_v57 }
  0x9f   : > { %v655_v62 = vpop.f32.mrf.mxu2  ;;  %v700_v63 = vpop.f32.mrf.mxu3 }
  0xa0   : > { %1400 = vst [vmem:[%s1776_s29] sm:$0xff] %v1399_v60   ;;  %v656_v2 = vadd.f32 %v1750_v40, %v655_v62  ;;  %v701_v3 = vadd.f32 %v1750_v40, %v700_v63  ;;  %v568_v4 = vpop.f32.mrf.mxu0  ;;  %v613_v5 = vpop.f32.mrf.mxu1 }
  0xa1   : > { %1584 = vst [vmem:[%s1776_s29 + $0x48] sm:$0xff] %v1444_v61   ;;  %v569_v14 = vadd.f32 %v1750_v40, %v568_v4  ;;  %v614_v15 = vadd.f32 %v1750_v40, %v613_v5 }
  0xa2   : > { %vm780_vm7 = vcmp.gt.f32.partialorder %v656_v2, 0.0  ;;  %v854_v6 = vmul.f32 %v1760_v42, %v656_v2  ;;  %vm798_vm8 = vcmp.gt.f32.partialorder %v701_v3, 0.0  ;;  %v872_v7 = vmul.f32 %v1760_v42, %v701_v3 }
  0xa3   : > { %v819_v20 = vmul.f32 %v1760_v42, %v569_v14  ;;  %v837_v21 = vmul.f32 %v1760_v42, %v614_v15  ;;  %vm745_vm9 = vcmp.gt.f32.partialorder %v569_v14, 0.0  ;;  %vm763_vm10 = vcmp.gt.f32.partialorder %v614_v15, 0.0 }
  0xa4   : > { %v926_v10 = vsel %vm780_vm7, %v656_v2, %v854_v6  ;;  %v944_v11 = vsel %vm798_vm8, %v701_v3, %v872_v7 }
  0xa5   : > { %v1489_v12 = vpack.c.bf16 %v926_v10, %v925_v8  ;;  %v1534_v13 = vpack.c.bf16 %v944_v11, %v943_v9  ;;  %v891_v28 = vsel %vm745_vm9, %v569_v14, %v819_v20  ;;  %v909_v29 = vsel %vm763_vm10, %v614_v15, %v837_v21 }
  0xa7   : > { %1593 = vst [vmem:[%s1776_s29 + $0x90] sm:$0xff] %v1489_v12   ;;  %v658_v16 = vpop.f32.mrf.mxu2  ;;  %v703_v17 = vpop.f32.mrf.mxu3 }
  0xa8   : > { %1602 = vst [vmem:[%s1776_s29 + $0xd8] sm:$0xff] %v1534_v13   ;;  %v570_v18 = vpop.f32.mrf.mxu0  ;;  %v615_v19 = vpop.f32.mrf.mxu1  ;;  %v659_v26 = vadd.f32 %v1750_v40, %v658_v16  ;;  %v704_v27 = vadd.f32 %v1750_v40, %v703_v17 }
  0xa9   : > { %v571_v22 = vadd.f32 %v1750_v40, %v570_v18  ;;  %v616_v23 = vadd.f32 %v1750_v40, %v615_v19 }
  0xaa   : > { %v855_v36 = vmul.f32 %v1760_v42, %v659_v26  ;;  %v873_v37 = vmul.f32 %v1760_v42, %v704_v27  ;;  %vm781_vm13 = vcmp.gt.f32.partialorder %v659_v26, 0.0  ;;  %vm799_vm14 = vcmp.gt.f32.partialorder %v704_v27, 0.0 }
  0xab   : > { %vm746_vm11 = vcmp.gt.f32.partialorder %v571_v22, 0.0  ;;  %v820_v24 = vmul.f32 %v1760_v42, %v571_v22  ;;  %vm764_vm12 = vcmp.gt.f32.partialorder %v616_v23, 0.0  ;;  %v838_v25 = vmul.f32 %v1760_v42, %v616_v23 }
  0xac   : > { %v927_v46 = vsel %vm781_vm13, %v659_v26, %v855_v36  ;;  %v945_v47 = vsel %vm799_vm14, %v704_v27, %v873_v37 }
  0xad   : > { %v892_v30 = vsel %vm746_vm11, %v571_v22, %v820_v24  ;;  %v910_v31 = vsel %vm764_vm12, %v616_v23, %v838_v25 }
  0xae   : > { %v1404_v32 = vpack.c.bf16 %v892_v30, %v891_v28  ;;  %v1449_v33 = vpack.c.bf16 %v910_v31, %v909_v29 }
  0xaf   : > { %v660_v34 = vpop.f32.mrf.mxu2  ;;  %v705_v35 = vpop.f32.mrf.mxu3 }
  0xb0   : > { %1576 = vst [vmem:[%s1776_s29 + $0x8] sm:$0xff] %v1404_v32   ;;  %v661_v38 = vadd.f32 %v1750_v40, %v660_v34  ;;  %v706_v39 = vadd.f32 %v1750_v40, %v705_v35  ;;  %v573_v41 = vpop.f32.mrf.mxu0  ;;  %v618_v43 = vpop.f32.mrf.mxu1 }
  0xb1   : > { %1585 = vst [vmem:[%s1776_s29 + $0x50] sm:$0xff] %v1449_v33   ;;  %v574_v52 = vadd.f32 %v1750_v40, %v573_v41  ;;  %v619_v53 = vadd.f32 %v1750_v40, %v618_v43 }
  0xb2   : > { %vm782_vm15 = vcmp.gt.f32.partialorder %v661_v38, 0.0  ;;  %v856_v44 = vmul.f32 %v1760_v42, %v661_v38  ;;  %vm800_vm0 = vcmp.gt.f32.partialorder %v706_v39, 0.0  ;;  %v874_v45 = vmul.f32 %v1760_v42, %v706_v39 }
  0xb3   : > { %v821_v58 = vmul.f32 %v1760_v42, %v574_v52  ;;  %v839_v59 = vmul.f32 %v1760_v42, %v619_v53  ;;  %vm747_vm1 = vcmp.gt.f32.partialorder %v574_v52, 0.0  ;;  %vm765_vm2 = vcmp.gt.f32.partialorder %v619_v53, 0.0 }
  0xb4   : > { %v928_v48 = vsel %vm782_vm15, %v661_v38, %v856_v44  ;;  %v946_v49 = vsel %vm800_vm0, %v706_v39, %v874_v45 }
  0xb5   : > { %v1494_v50 = vpack.c.bf16 %v928_v48, %v927_v46  ;;  %v1539_v51 = vpack.c.bf16 %v946_v49, %v945_v47  ;;  %v893_v2 = vsel %vm747_vm1, %v574_v52, %v821_v58  ;;  %v911_v3 = vsel %vm765_vm2, %v619_v53, %v839_v59 }
  0xb7   : > { %1594 = vst [vmem:[%s1776_s29 + $0x98] sm:$0xff] %v1494_v50   ;;  %v663_v54 = vpop.f32.mrf.mxu2  ;;  %v708_v55 = vpop.f32.mrf.mxu3 }
  0xb8   : > { %1603 = vst [vmem:[%s1776_s29 + $0xe0] sm:$0xff] %v1539_v51   ;;  %v575_v56 = vpop.f32.mrf.mxu0  ;;  %v620_v57 = vpop.f32.mrf.mxu1  ;;  %v664_v0 = vadd.f32 %v1750_v40, %v663_v54  ;;  %v709_v1 = vadd.f32 %v1750_v40, %v708_v55 }
  0xb9   : > { %v576_v60 = vadd.f32 %v1750_v40, %v575_v56  ;;  %v621_v61 = vadd.f32 %v1750_v40, %v620_v57 }
  0xba   : > { %v857_v10 = vmul.f32 %v1760_v42, %v664_v0  ;;  %v875_v11 = vmul.f32 %v1760_v42, %v709_v1  ;;  %vm783_vm5 = vcmp.gt.f32.partialorder %v664_v0, 0.0  ;;  %vm801_vm6 = vcmp.gt.f32.partialorder %v709_v1, 0.0 }
  0xbb   : > { %vm748_vm3 = vcmp.gt.f32.partialorder %v576_v60, 0.0  ;;  %v822_v62 = vmul.f32 %v1760_v42, %v576_v60  ;;  %vm766_vm4 = vcmp.gt.f32.partialorder %v621_v61, 0.0  ;;  %v840_v63 = vmul.f32 %v1760_v42, %v621_v61 }
  0xbc   : > { %v929_v18 = vsel %vm783_vm5, %v664_v0, %v857_v10  ;;  %v947_v19 = vsel %vm801_vm6, %v709_v1, %v875_v11 }
  0xbd   : > { %v894_v4 = vsel %vm748_vm3, %v576_v60, %v822_v62  ;;  %v912_v5 = vsel %vm766_vm4, %v621_v61, %v840_v63 }
  0xbe   : > { %v1409_v6 = vpack.c.bf16 %v894_v4, %v893_v2  ;;  %v1454_v7 = vpack.c.bf16 %v912_v5, %v911_v3 }
  0xbf   : > { %v665_v8 = vpop.f32.mrf.mxu2  ;;  %v710_v9 = vpop.f32.mrf.mxu3 }
  0xc0   : > { %1577 = vst [vmem:[%s1776_s29 + $0x10] sm:$0xff] %v1409_v6   ;;  %v666_v12 = vadd.f32 %v1750_v40, %v665_v8  ;;  %v711_v13 = vadd.f32 %v1750_v40, %v710_v9  ;;  %v578_v14 = vpop.f32.mrf.mxu0  ;;  %v623_v15 = vpop.f32.mrf.mxu1 }
  0xc1   : > { %1586 = vst [vmem:[%s1776_s29 + $0x58] sm:$0xff] %v1454_v7   ;;  %v579_v24 = vadd.f32 %v1750_v40, %v578_v14  ;;  %v624_v25 = vadd.f32 %v1750_v40, %v623_v15 }
  0xc2   : > { %vm784_vm7 = vcmp.gt.f32.partialorder %v666_v12, 0.0  ;;  %v858_v16 = vmul.f32 %v1760_v42, %v666_v12  ;;  %vm802_vm8 = vcmp.gt.f32.partialorder %v711_v13, 0.0  ;;  %v876_v17 = vmul.f32 %v1760_v42, %v711_v13 }
  0xc3   : > { %v823_v30 = vmul.f32 %v1760_v42, %v579_v24  ;;  %v841_v31 = vmul.f32 %v1760_v42, %v624_v25  ;;  %vm749_vm9 = vcmp.gt.f32.partialorder %v579_v24, 0.0  ;;  %vm767_vm10 = vcmp.gt.f32.partialorder %v624_v25, 0.0 }
  0xc4   : > { %v930_v20 = vsel %vm784_vm7, %v666_v12, %v858_v16  ;;  %v948_v21 = vsel %vm802_vm8, %v711_v13, %v876_v17 }
  0xc5   : > { %v1499_v22 = vpack.c.bf16 %v930_v20, %v929_v18  ;;  %v1544_v23 = vpack.c.bf16 %v948_v21, %v947_v19  ;;  %v895_v38 = vsel %vm749_vm9, %v579_v24, %v823_v30  ;;  %v913_v39 = vsel %vm767_vm10, %v624_v25, %v841_v31 }
  0xc7   : > { %1595 = vst [vmem:[%s1776_s29 + $0xa0] sm:$0xff] %v1499_v22   ;;  %v668_v26 = vpop.f32.mrf.mxu2  ;;  %v713_v27 = vpop.f32.mrf.mxu3 }
  0xc8   : > { %1604 = vst [vmem:[%s1776_s29 + $0xe8] sm:$0xff] %v1544_v23   ;;  %v580_v28 = vpop.f32.mrf.mxu0  ;;  %v625_v29 = vpop.f32.mrf.mxu1  ;;  %v669_v36 = vadd.f32 %v1750_v40, %v668_v26  ;;  %v714_v37 = vadd.f32 %v1750_v40, %v713_v27 }
  0xc9   : > { %v581_v32 = vadd.f32 %v1750_v40, %v580_v28  ;;  %v626_v33 = vadd.f32 %v1750_v40, %v625_v29 }
  0xca   : > { %v859_v48 = vmul.f32 %v1760_v42, %v669_v36  ;;  %v877_v49 = vmul.f32 %v1760_v42, %v714_v37  ;;  %vm785_vm13 = vcmp.gt.f32.partialorder %v669_v36, 0.0  ;;  %vm803_vm14 = vcmp.gt.f32.partialorder %v714_v37, 0.0 }
  0xcb   : > { %vm750_vm11 = vcmp.gt.f32.partialorder %v581_v32, 0.0  ;;  %v824_v34 = vmul.f32 %v1760_v42, %v581_v32  ;;  %vm768_vm12 = vcmp.gt.f32.partialorder %v626_v33, 0.0  ;;  %v842_v35 = vmul.f32 %v1760_v42, %v626_v33 }
  0xcc   : > { %v931_v56 = vsel %vm785_vm13, %v669_v36, %v859_v48  ;;  %v949_v57 = vsel %vm803_vm14, %v714_v37, %v877_v49 }
  0xcd   : > { %v896_v41 = vsel %vm750_vm11, %v581_v32, %v824_v34  ;;  %v914_v43 = vsel %vm768_vm12, %v626_v33, %v842_v35 }
  0xce   : > { %v1414_v44 = vpack.c.bf16 %v896_v41, %v895_v38  ;;  %v1459_v45 = vpack.c.bf16 %v914_v43, %v913_v39 }
  0xcf   : > { %v670_v46 = vpop.f32.mrf.mxu2  ;;  %v715_v47 = vpop.f32.mrf.mxu3 }
  0xd0   : > { %1578 = vst [vmem:[%s1776_s29 + $0x18] sm:$0xff] %v1414_v44   ;;  %v671_v50 = vadd.f32 %v1750_v40, %v670_v46  ;;  %v716_v51 = vadd.f32 %v1750_v40, %v715_v47  ;;  %v583_v52 = vpop.f32.mrf.mxu0  ;;  %v628_v53 = vpop.f32.mrf.mxu1 }
  0xd1   : > { %1587 = vst [vmem:[%s1776_s29 + $0x60] sm:$0xff] %v1459_v45   ;;  %v584_v62 = vadd.f32 %v1750_v40, %v583_v52  ;;  %v629_v63 = vadd.f32 %v1750_v40, %v628_v53 }
  0xd2   : > { %vm786_vm15 = vcmp.gt.f32.partialorder %v671_v50, 0.0  ;;  %v860_v54 = vmul.f32 %v1760_v42, %v671_v50  ;;  %vm804_vm0 = vcmp.gt.f32.partialorder %v716_v51, 0.0  ;;  %v878_v55 = vmul.f32 %v1760_v42, %v716_v51 }
  0xd3   : > { %v825_v4 = vmul.f32 %v1760_v42, %v584_v62  ;;  %v843_v5 = vmul.f32 %v1760_v42, %v629_v63  ;;  %vm751_vm1 = vcmp.gt.f32.partialorder %v584_v62, 0.0  ;;  %vm769_vm2 = vcmp.gt.f32.partialorder %v629_v63, 0.0 }
  0xd4   : > { %v932_v58 = vsel %vm786_vm15, %v671_v50, %v860_v54  ;;  %v950_v59 = vsel %vm804_vm0, %v716_v51, %v878_v55 }
  0xd5   : > { %v1504_v60 = vpack.c.bf16 %v932_v58, %v931_v56  ;;  %v1549_v61 = vpack.c.bf16 %v950_v59, %v949_v57  ;;  %v897_v12 = vsel %vm751_vm1, %v584_v62, %v825_v4  ;;  %v915_v13 = vsel %vm769_vm2, %v629_v63, %v843_v5 }
  0xd7   : > { %1596 = vst [vmem:[%s1776_s29 + $0xa8] sm:$0xff] %v1504_v60   ;;  %v673_v0 = vpop.f32.mrf.mxu2  ;;  %v718_v1 = vpop.f32.mrf.mxu3 }
  0xd8   : > { %1605 = vst [vmem:[%s1776_s29 + $0xf0] sm:$0xff] %v1549_v61   ;;  %v585_v2 = vpop.f32.mrf.mxu0  ;;  %v630_v3 = vpop.f32.mrf.mxu1  ;;  %v674_v10 = vadd.f32 %v1750_v40, %v673_v0  ;;  %v719_v11 = vadd.f32 %v1750_v40, %v718_v1 }
  0xd9   : > { %v586_v6 = vadd.f32 %v1750_v40, %v585_v2  ;;  %v631_v7 = vadd.f32 %v1750_v40, %v630_v3 }
  0xda   : > { %v861_v20 = vmul.f32 %v1760_v42, %v674_v10  ;;  %v879_v21 = vmul.f32 %v1760_v42, %v719_v11  ;;  %vm787_vm5 = vcmp.gt.f32.partialorder %v674_v10, 0.0  ;;  %vm805_vm6 = vcmp.gt.f32.partialorder %v719_v11, 0.0 }
  0xdb   : > { %vm752_vm3 = vcmp.gt.f32.partialorder %v586_v6, 0.0  ;;  %v826_v8 = vmul.f32 %v1760_v42, %v586_v6  ;;  %vm770_vm4 = vcmp.gt.f32.partialorder %v631_v7, 0.0  ;;  %v844_v9 = vmul.f32 %v1760_v42, %v631_v7 }
  0xdc   : > { %v933_v28 = vsel %vm787_vm5, %v674_v10, %v861_v20  ;;  %v951_v29 = vsel %vm805_vm6, %v719_v11, %v879_v21 }
  0xdd   : > { %v898_v14 = vsel %vm752_vm3, %v586_v6, %v826_v8  ;;  %v916_v15 = vsel %vm770_vm4, %v631_v7, %v844_v9 }
  0xde   : > { %v1419_v16 = vpack.c.bf16 %v898_v14, %v897_v12  ;;  %v1464_v17 = vpack.c.bf16 %v916_v15, %v915_v13 }
  0xdf   : > { %v675_v18 = vpop.f32.mrf.mxu2  ;;  %v720_v19 = vpop.f32.mrf.mxu3 }
  0xe0   : > { %1579 = vst [vmem:[%s1776_s29 + $0x20] sm:$0xff] %v1419_v16   ;;  %v676_v22 = vadd.f32 %v1750_v40, %v675_v18  ;;  %v721_v23 = vadd.f32 %v1750_v40, %v720_v19  ;;  %v588_v24 = vpop.f32.mrf.mxu0  ;;  %v633_v25 = vpop.f32.mrf.mxu1 }
  0xe1   : > { %1588 = vst [vmem:[%s1776_s29 + $0x68] sm:$0xff] %v1464_v17   ;;  %v589_v34 = vadd.f32 %v1750_v40, %v588_v24  ;;  %v634_v35 = vadd.f32 %v1750_v40, %v633_v25 }
  0xe2   : > { %vm788_vm7 = vcmp.gt.f32.partialorder %v676_v22, 0.0  ;;  %v862_v26 = vmul.f32 %v1760_v42, %v676_v22  ;;  %vm806_vm8 = vcmp.gt.f32.partialorder %v721_v23, 0.0  ;;  %v880_v27 = vmul.f32 %v1760_v42, %v721_v23 }
  0xe3   : > { %v827_v41 = vmul.f32 %v1760_v42, %v589_v34  ;;  %v845_v43 = vmul.f32 %v1760_v42, %v634_v35  ;;  %vm753_vm9 = vcmp.gt.f32.partialorder %v589_v34, 0.0  ;;  %vm771_vm10 = vcmp.gt.f32.partialorder %v634_v35, 0.0 }
  0xe4   : > { %v934_v30 = vsel %vm788_vm7, %v676_v22, %v862_v26  ;;  %v952_v31 = vsel %vm806_vm8, %v721_v23, %v880_v27 }
  0xe5   : > { %v1509_v32 = vpack.c.bf16 %v934_v30, %v933_v28  ;;  %v1554_v33 = vpack.c.bf16 %v952_v31, %v951_v29  ;;  %v899_v50 = vsel %vm753_vm9, %v589_v34, %v827_v41  ;;  %v917_v51 = vsel %vm771_vm10, %v634_v35, %v845_v43 }
  0xe7   : > { %1597 = vst [vmem:[%s1776_s29 + $0xb0] sm:$0xff] %v1509_v32   ;;  %v678_v36 = vpop.f32.mrf.mxu2  ;;  %v723_v37 = vpop.f32.mrf.mxu3 }
  0xe8   : > { %1606 = vst [vmem:[%s1776_s29 + $0xf8] sm:$0xff] %v1554_v33   ;;  %v590_v38 = vpop.f32.mrf.mxu0  ;;  %v635_v39 = vpop.f32.mrf.mxu1  ;;  %v679_v48 = vadd.f32 %v1750_v40, %v678_v36  ;;  %v724_v49 = vadd.f32 %v1750_v40, %v723_v37 }
  0xe9   : > { %v591_v44 = vadd.f32 %v1750_v40, %v590_v38  ;;  %v636_v45 = vadd.f32 %v1750_v40, %v635_v39 }
  0xea   : > { %v863_v58 = vmul.f32 %v1760_v42, %v679_v48  ;;  %v881_v59 = vmul.f32 %v1760_v42, %v724_v49  ;;  %vm789_vm13 = vcmp.gt.f32.partialorder %v679_v48, 0.0  ;;  %vm807_vm14 = vcmp.gt.f32.partialorder %v724_v49, 0.0 }
  0xeb   : > { %vm754_vm11 = vcmp.gt.f32.partialorder %v591_v44, 0.0  ;;  %v828_v46 = vmul.f32 %v1760_v42, %v591_v44  ;;  %vm772_vm12 = vcmp.gt.f32.partialorder %v636_v45, 0.0  ;;  %v846_v47 = vmul.f32 %v1760_v42, %v636_v45 }
  0xec   : > { %v935_v2 = vsel %vm789_vm13, %v679_v48, %v863_v58  ;;  %v953_v3 = vsel %vm807_vm14, %v724_v49, %v881_v59 }
  0xed   : > { %v900_v52 = vsel %vm754_vm11, %v591_v44, %v828_v46  ;;  %v918_v53 = vsel %vm772_vm12, %v636_v45, %v846_v47 }
  0xee   : > { %v1424_v54 = vpack.c.bf16 %v900_v52, %v899_v50  ;;  %v1469_v55 = vpack.c.bf16 %v918_v53, %v917_v51 }
  0xef   : > { %v680_v56 = vpop.f32.mrf.mxu2  ;;  %v725_v57 = vpop.f32.mrf.mxu3 }
  0xf0   : > { %1580 = vst [vmem:[%s1776_s29 + $0x28] sm:$0xff] %v1424_v54   ;;  %v681_v60 = vadd.f32 %v1750_v40, %v680_v56  ;;  %v726_v61 = vadd.f32 %v1750_v40, %v725_v57  ;;  %v593_v62 = vpop.f32.mrf.mxu0  ;;  %v638_v63 = vpop.f32.mrf.mxu1 }
  0xf1   : > { %1589 = vst [vmem:[%s1776_s29 + $0x70] sm:$0xff] %v1469_v55   ;;  %v594_v8 = vadd.f32 %v1750_v40, %v593_v62  ;;  %v639_v9 = vadd.f32 %v1750_v40, %v638_v63 }
  0xf2   : > { %vm790_vm15 = vcmp.gt.f32.partialorder %v681_v60, 0.0  ;;  %v864_v0 = vmul.f32 %v1760_v42, %v681_v60  ;;  %vm808_vm0 = vcmp.gt.f32.partialorder %v726_v61, 0.0  ;;  %v882_v1 = vmul.f32 %v1760_v42, %v726_v61 }
  0xf3   : > { %v829_v14 = vmul.f32 %v1760_v42, %v594_v8  ;;  %v847_v15 = vmul.f32 %v1760_v42, %v639_v9  ;;  %vm755_vm1 = vcmp.gt.f32.partialorder %v594_v8, 0.0  ;;  %vm773_vm2 = vcmp.gt.f32.partialorder %v639_v9, 0.0 }
  0xf4   : > { %v936_v4 = vsel %vm790_vm15, %v681_v60, %v864_v0  ;;  %v954_v5 = vsel %vm808_vm0, %v726_v61, %v882_v1 }
  0xf5   : > { %v1514_v6 = vpack.c.bf16 %v936_v4, %v935_v2  ;;  %v1559_v7 = vpack.c.bf16 %v954_v5, %v953_v3  ;;  %v901_v22 = vsel %vm755_vm1, %v594_v8, %v829_v14  ;;  %v919_v23 = vsel %vm773_vm2, %v639_v9, %v847_v15 }
  0xf7   : > { %1598 = vst [vmem:[%s1776_s29 + $0xb8] sm:$0xff] %v1514_v6   ;;  %v683_v10 = vpop.f32.mrf.mxu2  ;;  %v728_v11 = vpop.f32.mrf.mxu3 }
  0xf8   : > { %1607 = vst [vmem:[%s1776_s29 + $0x100] sm:$0xff] %v1559_v7   ;;  %v595_v12 = vpop.f32.mrf.mxu0  ;;  %v640_v13 = vpop.f32.mrf.mxu1  ;;  %v684_v20 = vadd.f32 %v1750_v40, %v683_v10  ;;  %v729_v21 = vadd.f32 %v1750_v40, %v728_v11 }
  0xf9   : > { %v596_v16 = vadd.f32 %v1750_v40, %v595_v12  ;;  %v641_v17 = vadd.f32 %v1750_v40, %v640_v13 }
  0xfa   : > { %v865_v30 = vmul.f32 %v1760_v42, %v684_v20  ;;  %v883_v31 = vmul.f32 %v1760_v42, %v729_v21  ;;  %vm791_vm5 = vcmp.gt.f32.partialorder %v684_v20, 0.0  ;;  %vm809_vm6 = vcmp.gt.f32.partialorder %v729_v21, 0.0 }
  0xfb   : > { %vm756_vm3 = vcmp.gt.f32.partialorder %v596_v16, 0.0  ;;  %v830_v18 = vmul.f32 %v1760_v42, %v596_v16  ;;  %vm774_vm4 = vcmp.gt.f32.partialorder %v641_v17, 0.0  ;;  %v848_v19 = vmul.f32 %v1760_v42, %v641_v17 }
  0xfc   : > { %v937_v38 = vsel %vm791_vm5, %v684_v20, %v865_v30  ;;  %v955_v39 = vsel %vm809_vm6, %v729_v21, %v883_v31 }
  0xfd   : > { %v902_v24 = vsel %vm756_vm3, %v596_v16, %v830_v18  ;;  %v920_v25 = vsel %vm774_vm4, %v641_v17, %v848_v19 }
  0xfe   : > { %v1429_v26 = vpack.c.bf16 %v902_v24, %v901_v22  ;;  %v1474_v27 = vpack.c.bf16 %v920_v25, %v919_v23 }
  0xff   : > { %v685_v28 = vpop.f32.mrf.mxu2  ;;  %v730_v29 = vpop.f32.mrf.mxu3 }
 0x100   : > { %1581 = vst [vmem:[%s1776_s29 + $0x30] sm:$0xff] %v1429_v26   ;;  %v686_v32 = vadd.f32 %v1750_v40, %v685_v28  ;;  %v731_v33 = vadd.f32 %v1750_v40, %v730_v29  ;;  %v598_v34 = vpop.f32.mrf.mxu0  ;;  %v643_v35 = vpop.f32.mrf.mxu1 }
 0x101   : > { %1590 = vst [vmem:[%s1776_s29 + $0x78] sm:$0xff] %v1474_v27   ;;  %v599_v46 = vadd.f32 %v1750_v40, %v598_v34  ;;  %v644_v47 = vadd.f32 %v1750_v40, %v643_v35 }
 0x102   : > { %vm792_vm7 = vcmp.gt.f32.partialorder %v686_v32, 0.0  ;;  %v866_v36 = vmul.f32 %v1760_v42, %v686_v32  ;;  %vm810_vm8 = vcmp.gt.f32.partialorder %v731_v33, 0.0  ;;  %v884_v37 = vmul.f32 %v1760_v42, %v731_v33 }
 0x103   : > { %v831_v52 = vmul.f32 %v1760_v42, %v599_v46  ;;  %v849_v53 = vmul.f32 %v1760_v42, %v644_v47  ;;  %vm757_vm9 = vcmp.gt.f32.partialorder %v599_v46, 0.0  ;;  %vm775_vm10 = vcmp.gt.f32.partialorder %v644_v47, 0.0 }
 0x104   : > { %v938_v41 = vsel %vm792_vm7, %v686_v32, %v866_v36  ;;  %v956_v43 = vsel %vm810_vm8, %v731_v33, %v884_v37 }
 0x105   : > { %v1519_v44 = vpack.c.bf16 %v938_v41, %v937_v38  ;;  %v1564_v45 = vpack.c.bf16 %v956_v43, %v955_v39  ;;  %v903_v60 = vsel %vm757_vm9, %v599_v46, %v831_v52  ;;  %v921_v61 = vsel %vm775_vm10, %v644_v47, %v849_v53 }
 0x107   : > { %1599 = vst [vmem:[%s1776_s29 + $0xc0] sm:$0xff] %v1519_v44   ;;  %v688_v48 = vpop.f32.mrf.mxu2  ;;  %v733_v49 = vpop.f32.mrf.mxu3 }
 0x108   : > { %1608 = vst [vmem:[%s1776_s29 + $0x108] sm:$0xff] %v1564_v45   ;;  %v600_v50 = vpop.f32.mrf.mxu0  ;;  %v645_v51 = vpop.f32.mrf.mxu1  ;;  %v689_v58 = vadd.f32 %v1750_v40, %v688_v48  ;;  %v734_v59 = vadd.f32 %v1750_v40, %v733_v49 }
 0x109   : > { %v601_v54 = vadd.f32 %v1750_v40, %v600_v50  ;;  %v646_v55 = vadd.f32 %v1750_v40, %v645_v51 }
 0x10a   : > { %v867_v4 = vmul.f32 %v1760_v42, %v689_v58  ;;  %v885_v5 = vmul.f32 %v1760_v42, %v734_v59  ;;  %vm793_vm13 = vcmp.gt.f32.partialorder %v689_v58, 0.0  ;;  %vm811_vm14 = vcmp.gt.f32.partialorder %v734_v59, 0.0 }
 0x10b   : > { %vm758_vm11 = vcmp.gt.f32.partialorder %v601_v54, 0.0  ;;  %v832_v56 = vmul.f32 %v1760_v42, %v601_v54  ;;  %vm776_vm12 = vcmp.gt.f32.partialorder %v646_v55, 0.0  ;;  %v850_v57 = vmul.f32 %v1760_v42, %v646_v55 }
 0x10c   : > { %v939_v12 = vsel %vm793_vm13, %v689_v58, %v867_v4  ;;  %v957_v13 = vsel %vm811_vm14, %v734_v59, %v885_v5 }
 0x10d   : > { %v904_v62 = vsel %vm758_vm11, %v601_v54, %v832_v56  ;;  %v922_v63 = vsel %vm776_vm12, %v646_v55, %v850_v57 }
 0x10e   : > { %v1434_v0 = vpack.c.bf16 %v904_v62, %v903_v60  ;;  %v1479_v1 = vpack.c.bf16 %v922_v63, %v921_v61 }
 0x10f   : > { %v690_v2 = vpop.f32.mrf.mxu2  ;;  %v735_v3 = vpop.f32.mrf.mxu3 }
 0x110   : > { %1582 = vst [vmem:[%s1776_s29 + $0x38] sm:$0xff] %v1434_v0   ;;  %v691_v6 = vadd.f32 %v1750_v40, %v690_v2  ;;  %v736_v7 = vadd.f32 %v1750_v40, %v735_v3  ;;  %v603_v8 = vpop.f32.mrf.mxu0  ;;  %v648_v9 = vpop.f32.mrf.mxu1 }
 0x111   : > { %1591 = vst [vmem:[%s1776_s29 + $0x80] sm:$0xff] %v1479_v1   ;;  %v604_v18 = vadd.f32 %v1750_v40, %v603_v8  ;;  %v649_v19 = vadd.f32 %v1750_v40, %v648_v9 }
 0x112   : > { %vm794_vm15 = vcmp.gt.f32.partialorder %v691_v6, 0.0  ;;  %v868_v10 = vmul.f32 %v1760_v42, %v691_v6  ;;  %vm812_vm0 = vcmp.gt.f32.partialorder %v736_v7, 0.0  ;;  %v886_v11 = vmul.f32 %v1760_v42, %v736_v7 }
 0x113   : > { %v833_v24 = vmul.f32 %v1760_v42, %v604_v18  ;;  %v851_v25 = vmul.f32 %v1760_v42, %v649_v19  ;;  %vm759_vm1 = vcmp.gt.f32.partialorder %v604_v18, 0.0  ;;  %vm777_vm2 = vcmp.gt.f32.partialorder %v649_v19, 0.0 }
 0x114   : > { %v940_v14 = vsel %vm794_vm15, %v691_v6, %v868_v10  ;;  %v958_v15 = vsel %vm812_vm0, %v736_v7, %v886_v11 }
 0x115   : > { %v1524_v16 = vpack.c.bf16 %v940_v14, %v939_v12  ;;  %v1569_v17 = vpack.c.bf16 %v958_v15, %v957_v13  ;;  %v905_v32 = vsel %vm759_vm1, %v604_v18, %v833_v24  ;;  %v923_v33 = vsel %vm777_vm2, %v649_v19, %v851_v25 }
 0x117   : > { %1600 = vst [vmem:[%s1776_s29 + $0xc8] sm:$0xff] %v1524_v16   ;;  %v693_v20 = vpop.f32.mrf.mxu2  ;;  %v738_v21 = vpop.f32.mrf.mxu3 }
 0x118   : > { %1609 = vst [vmem:[%s1776_s29 + $0x110] sm:$0xff] %v1569_v17   ;;  %v605_v22 = vpop.f32.mrf.mxu0  ;;  %v650_v23 = vpop.f32.mrf.mxu1  ;;  %v694_v30 = vadd.f32 %v1750_v40, %v693_v20  ;;  %v739_v31 = vadd.f32 %v1750_v40, %v738_v21 }
 0x119   : > { %v606_v26 = vadd.f32 %v1750_v40, %v605_v22  ;;  %v651_v27 = vadd.f32 %v1750_v40, %v650_v23 }
 0x11a   : > { %v869_v41 = vmul.f32 %v1760_v42, %v694_v30  ;;  %v887_v43 = vmul.f32 %v1760_v42, %v739_v31  ;;  %vm795_vm5 = vcmp.gt.f32.partialorder %v694_v30, 0.0  ;;  %vm813_vm6 = vcmp.gt.f32.partialorder %v739_v31, 0.0 }
 0x11b   : > { %vm760_vm3 = vcmp.gt.f32.partialorder %v606_v26, 0.0  ;;  %v834_v28 = vmul.f32 %v1760_v42, %v606_v26  ;;  %vm778_vm4 = vcmp.gt.f32.partialorder %v651_v27, 0.0  ;;  %v852_v29 = vmul.f32 %v1760_v42, %v651_v27 }
 0x11c   : > { %v941_v48 = vsel %vm795_vm5, %v694_v30, %v869_v41  ;;  %v959_v49 = vsel %vm813_vm6, %v739_v31, %v887_v43 }
 0x11d   : > { %v906_v34 = vsel %vm760_vm3, %v606_v26, %v834_v28  ;;  %v924_v35 = vsel %vm778_vm4, %v651_v27, %v852_v29 }
 0x11e   : > { %v1439_v36 = vpack.c.bf16 %v906_v34, %v905_v32  ;;  %v1484_v37 = vpack.c.bf16 %v924_v35, %v923_v33 }
 0x11f   : > { %v695_v38 = vpop.f32.mrf.mxu2  ;;  %v740_v39 = vpop.f32.mrf.mxu3 }
 0x120   : > { %1583 = vst [vmem:[%s1776_s29 + $0x40] sm:$0xff] %v1439_v36   ;;  %v696_v44 = vadd.f32 %v1750_v40, %v695_v38  ;;  %v741_v45 = vadd.f32 %v1750_v40, %v740_v39 }
 0x121   : > { %1592 = vst [vmem:[%s1776_s29 + $0x88] sm:$0xff] %v1484_v37  }
 0x122   : > { %vm796_vm7 = vcmp.gt.f32.partialorder %v696_v44, 0.0  ;;  %v870_v46 = vmul.f32 %v1760_v42, %v696_v44  ;;  %vm814_vm8 = vcmp.gt.f32.partialorder %v741_v45, 0.0  ;;  %v888_v47 = vmul.f32 %v1760_v42, %v741_v45 }
 0x124   : > { %v942_v50 = vsel %vm796_vm7, %v696_v44, %v870_v46  ;;  %v960_v51 = vsel %vm814_vm8, %v741_v45, %v888_v47 }
 0x125   : > { %v1529_v52 = vpack.c.bf16 %v942_v50, %v941_v48  ;;  %v1574_v53 = vpack.c.bf16 %v960_v51, %v959_v49 }
 0x127   : > { %1601 = vst [vmem:[%s1776_s29 + $0xd0] sm:$0xff] %v1529_v52  }
 0x128   : > { %1610 = vst [vmem:[%s1776_s29 + $0x118] sm:$0xff] %v1574_v53  }
 0x129 PF: > { %s13_s12 = sadd.s32 1, %s1633_s12  }
 0x12a   : > { %p10_p4 = scmp.ge.s32.totalorder %s13_s12, 4  }
 0x12c   :  { %12 = sbr.rel (!%p10_p4) target bundleno = 1 (0x1), region = 62 }

// kernel: rnet_forward.7
= control target key start
LH: loop header
LB: loop body
LE: loop exit
PB: predicated region body
PF: predicated region fallthrough
CT: control target
= control target key end

     0   :  { %s1332_s12 = smov 0   ;;  %s1334_s13 = smov 0   ;;  %s1604_s0 = inlined_call_operand.vmem [shape: bf16[242,256], index: 0, kind: input, shape index: {}]   ;;  %s1605_s1 = inlined_call_operand.vmem [shape: bf16[256,128], index: 1, kind: input, shape index: {}]   ;;  %s1606_s2 = inlined_call_operand.vmem [shape: f32[2,128], index: 2, kind: input, shape index: {}]   ;;  %s1607_s3 = inlined_call_operand.vmem [shape: bf16[242,128], index: 3, kind: output, shape index: {}]  }
   0x1   :  { %s1336_s14 = smov 0  }
   0x2 LB: > { %s1345_s15 = sadd.s32 4294967295, %s1278_s14   ;;  %s1347_s16 = sadd.s32 1, %s1278_s14   ;;  %s1278_s14 = sphi %s1336_s14, %s1616_s14   ;;  %s1274_s13 = sphi %s1334_s13, %s1615_s13   ;;  %s1270_s12 = sphi %s1332_s12, %s1614_s12  }
   0x3   : > { %s85_s17 = ssub.s32 %s1278_s14, %s1347_s16  ;;  %s88_s18 = sadd.s32 1, %s1274_s13 }
   0x4   : > { %p86_p0 = scmp.eq.s32.totalorder %s85_s17, 0  ;;  %p98_p1 = scmp.ne.s32.totalorder %s1274_s13, %s1270_s12 }
   0x5   : > { %p99_p2 = scmp.eq.s32.totalorder %s1345_s15, 1  ;;  %p885_p3 = scmp.ge.s32.totalorder %s1278_s14, 1 }
   0x6   : > { %s1355_s19 = scalar_select %p86_p0, %s1274_s13, %s88_s18  }
   0x7   : > { %p1357_p4 = por %p99_p2, %p98_p1  ;;  %p149_p5 = scmp.lt.s32.totalorder %s1278_s14, 3 }
   0x9   : > { %p150_p6 = pnand %p885_p3, %p149_p5 }
   0xa   : > { %s1380_s6 = sshll.u32 (!%p150_p6), %s1345_s15, 4  ;;  %s175_s22 = sand.u32 (!%p150_p6), 1, %s1270_s12  }
   0xb   : > { %153 = sbr.rel (%p150_p6) target bundleno = 294 (0x126), region = 32  ;;  %p184_p7 = scmp.lt.s32.totalorder (!%p150_p6), %s1380_s6, 30 }
   0xc   : > { %s886_s23 = sshll.u32 (!%p150_p6), %s175_s22, 6 }
   0xd   : > { %s1469_s12 = scalar_lea.vmem (!%p150_p6), [#allocation2], %s886_s23  }
  0x10   : > { %v1059_v0 = vld [vmem:[%s1605_s1 + $0x38] sm:$0xff]  ;;  %v1058_v2 = vld [vmem:[%s1605_s1 + $0x30] sm:$0xff]  ;;  %v1057_v4 = vld [vmem:[%s1605_s1 + $0x28] sm:$0xff]  ;;  %s185_s21 = scalar_select %p184_p7, %s1380_s6, 30 }
  0x11   : > { %v1067_v1 = vld [vmem:[%s1605_s1 + $0x78] sm:$0xff]  ;;  %426 = vmatpush.bf16.msra.mxu0 %v1059_v0  ;;  %1118 = vmatpush.bf16.msra.mxu2 %v1059_v0  ;;  %v1066_v3 = vld [vmem:[%s1605_s1 + $0x70] sm:$0xff]  ;;  %v1065_v5 = vld [vmem:[%s1605_s1 + $0x68] sm:$0xff]  ;;  %s614_s24 = ssub.s32 (%p1357_p4), 31, %s1380_s6  ;;  %s1068_s25 = sshll.u32 (%p1357_p4), %s1345_s15, 6 }
  0x12   : > { %475 = vmatpush.bf16.msra.mxu1 %v1067_v1  ;;  %1126 = vmatpush.bf16.msra.mxu3 %v1067_v1  ;;  %v1056_v6 = vld [vmem:[%s1605_s1 + $0x20] sm:$0xff]  ;;  %v1055_v8 = vld [vmem:[%s1605_s1 + $0x18] sm:$0xff]  ;;  %v1054_v10 = vld [vmem:[%s1605_s1 + $0x10] sm:$0xff]  ;;  %s1035_s26 = sshll.u32 %s185_s21, 3  ;;  %p615_p8 = scmp.lt.s32.totalorder (%p1357_p4), %s614_s24, 16 }
  0x13   : > { %v1064_v7 = vld [vmem:[%s1605_s1 + $0x60] sm:$0xff]  ;;  %v1063_v9 = vld [vmem:[%s1605_s1 + $0x58] sm:$0xff]  ;;  %v1062_v11 = vld [vmem:[%s1605_s1 + $0x50] sm:$0xff]  ;;  %s1408_s4 = scalar_lea.vmem %s1604_s0, %s1035_s26  ;;  %s1511_s28 = scalar_lea.vmem (%p1357_p4), %s1607_s3, %s1068_s25  }
  0x14   : > { %v1053_v12 = vld [vmem:[%s1605_s1 + $0x8] sm:$0xff]  ;;  %v1052_v14 = vld [vmem:[%s1605_s1] sm:$0xff]  ;;  %v900_v28 = vld [vmem:[%s1408_s4 + $0x10] sm:$0xf] }
  0x15   : > { %427 = vmatpush.bf16.msra.mxu0 %v1058_v2  ;;  %1119 = vmatpush.bf16.msra.mxu2 %v1058_v2  ;;  %v1061_v13 = vld [vmem:[%s1605_s1 + $0x48] sm:$0xff]  ;;  %v1060_v15 = vld [vmem:[%s1605_s1 + $0x40] sm:$0xff]  ;;  %v1039_v29 = vld [vmem:[%s1408_s4 + $0x14] sm:$0xf0] }
  0x16   : > { %476 = vmatpush.bf16.msra.mxu1 %v1066_v3  ;;  %1127 = vmatpush.bf16.msra.mxu3 %v1066_v3  ;;  %v892_v16 = vld [vmem:[%s1408_s4] sm:$0xf]  ;;  %v1037_v17 = vld [vmem:[%s1408_s4 + $0x4] sm:$0xf0]  ;;  %v1036_v20 = vld [vmem:[%s1408_s4 + $0x4] sm:$0xf]  ;;  %v901_v36 = vor.u32 %v1039_v29, %v900_v28 }
  0x17   : > { %v924_v18 = vld [vmem:[%s1408_s4 + $0x40] sm:$0xf]  ;;  %v1045_v19 = vld [vmem:[%s1408_s4 + $0x44] sm:$0xf0]  ;;  %v894_v21 = vld [vmem:[%s1408_s4 + $0x8] sm:$0xf0]  ;;  %v893_v24 = vor.u32 %v1037_v17, %v892_v16 }
  0x18   : > { %v1044_v22 = vld [vmem:[%s1408_s4 + $0x44] sm:$0xf]  ;;  %v926_v23 = vld [vmem:[%s1408_s4 + $0x48] sm:$0xf0]  ;;  %v925_v25 = vor.u32 %v1045_v19, %v924_v18  ;;  %v897_v26 = vor.u32 %v1036_v20, %v894_v21  ;;  %v932_v30 = vld [vmem:[%s1408_s4 + $0x50] sm:$0xf] }
  0x19   : > { %428 = vmatpush.bf16.msra.mxu0 %v1057_v4  ;;  %1120 = vmatpush.bf16.msra.mxu2 %v1057_v4  ;;  %v929_v27 = vor.u32 %v1044_v22, %v926_v23  ;;  %v1047_v31 = vld [vmem:[%s1408_s4 + $0x54] sm:$0xf0]  ;;  %v1038_v32 = vld [vmem:[%s1408_s4 + $0x14] sm:$0xf]  ;;  %v902_v33 = vld [vmem:[%s1408_s4 + $0x18] sm:$0xf0] }
  0x1a   : > { %477 = vmatpush.bf16.msra.mxu1 %v1065_v5  ;;  %1128 = vmatpush.bf16.msra.mxu3 %v1065_v5  ;;  %v1046_v34 = vld [vmem:[%s1408_s4 + $0x54] sm:$0xf]  ;;  %v934_v35 = vld [vmem:[%s1408_s4 + $0x58] sm:$0xf0]  ;;  %v933_v37 = vor.u32 %v1047_v31, %v932_v30  ;;  %v905_v38 = vor.u32 %v1038_v32, %v902_v33  ;;  %v908_v40 = vld [vmem:[%s1408_s4 + $0x20] sm:$0xf] }
  0x1b   : > { %v937_v39 = vor.u32 %v1046_v34, %v934_v35  ;;  %v1041_v41 = vld [vmem:[%s1408_s4 + $0x24] sm:$0xf0]  ;;  %v940_v42 = vld [vmem:[%s1408_s4 + $0x60] sm:$0xf]  ;;  %v1040_v44 = vld [vmem:[%s1408_s4 + $0x24] sm:$0xf] }
  0x1c   : > { %v1049_v43 = vld [vmem:[%s1408_s4 + $0x64] sm:$0xf0]  ;;  %v910_v45 = vld [vmem:[%s1408_s4 + $0x28] sm:$0xf0]  ;;  %v1048_v46 = vld [vmem:[%s1408_s4 + $0x64] sm:$0xf]  ;;  %v909_v48 = vor.u32 %v1041_v41, %v908_v40 }
  0x1d   : > { %429 = vmatpush.bf16.msra.mxu0 %v1056_v6  ;;  %1121 = vmatpush.bf16.msra.mxu2 %v1056_v6  ;;  %v942_v47 = vld [vmem:[%s1408_s4 + $0x68] sm:$0xf0]  ;;  %v941_v49 = vor.u32 %v1049_v43, %v940_v42  ;;  %v913_v50 = vor.u32 %v1040_v44, %v910_v45  ;;  %v916_v52 = vld [vmem:[%s1408_s4 + $0x30] sm:$0xf]  ;;  %v1043_v53 = vld [vmem:[%s1408_s4 + $0x34] sm:$0xf0] }
  0x1e   : > { %478 = vmatpush.bf16.msra.mxu1 %v1064_v7  ;;  %1129 = vmatpush.bf16.msra.mxu3 %v1064_v7  ;;  %v945_v51 = vor.u32 %v1048_v46, %v942_v47  ;;  %v948_v54 = vld [vmem:[%s1408_s4 + $0x70] sm:$0xf]  ;;  %v1051_v55 = vld [vmem:[%s1408_s4 + $0x74] sm:$0xf0]  ;;  %v1042_v56 = vld [vmem:[%s1408_s4 + $0x34] sm:$0xf]  ;;  %v917_v60 = vor.u32 %v1043_v53, %v916_v52 }
  0x1f   : > { %v918_v57 = vld [vmem:[%s1408_s4 + $0x38] sm:$0xf0]  ;;  %v1050_v58 = vld [vmem:[%s1408_s4 + $0x74] sm:$0xf]  ;;  %v949_v61 = vor.u32 %v1051_v55, %v948_v54  ;;  %v1454_v0 = vld [vmem:[%s1606_s2] ss:$0 sm:$0xff] }
  0x20   : > { %v950_v59 = vld [vmem:[%s1408_s4 + $0x78] sm:$0xf0]  ;;  %v921_v62 = vor.u32 %v1042_v56, %v918_v57  ;;  %v1460_v6 = vld [vmem:[%s1606_s2 + $0x1] ss:$0 sm:$0xff] }
  0x21   : > { %430 = vmatpush.bf16.msra.mxu0 %v1055_v8  ;;  %1122 = vmatpush.bf16.msra.mxu2 %v1055_v8  ;;  %v953_v63 = vor.u32 %v1050_v58, %v950_v59 }
  0x22   : > { %479 = vmatpush.bf16.msra.mxu1 %v1063_v9  ;;  %1130 = vmatpush.bf16.msra.mxu3 %v1063_v9 }
  0x25   : > { %431 = vmatpush.bf16.msra.mxu0 %v1054_v10  ;;  %1123 = vmatpush.bf16.msra.mxu2 %v1054_v10 }
  0x26   : > { %480 = vmatpush.bf16.msra.mxu1 %v1062_v11  ;;  %1131 = vmatpush.bf16.msra.mxu3 %v1062_v11 }
  0x29   : > { %432 = vmatpush.bf16.msra.mxu0 %v1053_v12  ;;  %1124 = vmatpush.bf16.msra.mxu2 %v1053_v12 }
  0x2a   : > { %481 = vmatpush.bf16.msra.mxu1 %v1061_v13  ;;  %1132 = vmatpush.bf16.msra.mxu3 %v1061_v13 }
  0x2d   : > { %433 = vmatpush.bf16.msra.mxu0 %v1052_v14  ;;  %1125 = vmatpush.bf16.msra.mxu2 %v1052_v14 }
  0x2e   : > { %482 = vmatpush.bf16.msra.mxu1 %v1060_v15  ;;  %1133 = vmatpush.bf16.msra.mxu3 %v1060_v15 }
  0x30   : > { %434 = vmatmul.bf16.vlgmr.msra.gmra.mxu0 %v893_v24  ;;  %454 = vmatmul.bf16.vlgmr.msra.gmra.mxu2 %v925_v25 }
  0x31   : > { %483 = vmatmul.bf16.vlgmr.msra.gmra.mxu1 %v897_v26  ;;  %503 = vmatmul.bf16.vlgmr.msra.gmra.mxu3 %v929_v27 }
  0x40   : > { %439 = vmatmul.bf16.gmra.mxu0 %v901_v36  ;;  %459 = vmatmul.bf16.gmra.mxu2 %v933_v37 }
  0x41   : > { %488 = vmatmul.bf16.gmra.mxu1 %v905_v38  ;;  %508 = vmatmul.bf16.gmra.mxu3 %v937_v39 }
  0x50   : > { %444 = vmatmul.bf16.gmra.mxu0 %v909_v48  ;;  %464 = vmatmul.bf16.gmra.mxu2 %v941_v49 }
  0x51   : > { %493 = vmatmul.bf16.gmra.mxu1 %v913_v50  ;;  %513 = vmatmul.bf16.gmra.mxu3 %v945_v51 }
  0x60   : > { %449 = vmatmul.bf16.gmra.mxu0 %v917_v60  ;;  %469 = vmatmul.bf16.gmra.mxu2 %v949_v61 }
  0x61   : > { %498 = vmatmul.bf16.gmra.mxu1 %v921_v62  ;;  %518 = vmatmul.bf16.gmra.mxu3 %v953_v63 }
  0xad   : > { %v435_v1 = vpop.f32.mrf.mxu0 }
  0xae   : > { %v484_v2 = vpop.f32.mrf.mxu1  ;;  %v436_v3 = vadd.f32 %v1454_v0, %v435_v1 }
  0xb0   : > { %v485_v5 = vadd.f32 %v484_v2, %v436_v3 }
  0xb2   : > { %v542_v12 = vmul.f32 %v1460_v6, %v485_v5  ;;  %vm524_vm0 = vcmp.gt.f32.partialorder %v485_v5, 0.0 }
  0xb3   : > { %v455_v4 = vpop.f32.mrf.mxu2 }
  0xb4   : > { %v504_v7 = vpop.f32.mrf.mxu3  ;;  %v456_v9 = vadd.f32 %v1454_v0, %v455_v4  ;;  %v558_v17 = vsel %vm524_vm0, %v485_v5, %v542_v12 }
  0xb5   : > { %v437_v8 = vpop.f32.mrf.mxu0 }
  0xb6   : > { %v438_v10 = vadd.f32 %v1454_v0, %v437_v8  ;;  %v486_v11 = vpop.f32.mrf.mxu1  ;;  %v505_v14 = vadd.f32 %v504_v7, %v456_v9 }
  0xb8   : > { %v487_v13 = vadd.f32 %v486_v11, %v438_v10  ;;  %v550_v23 = vmul.f32 %v1460_v6, %v505_v14  ;;  %vm532_vm2 = vcmp.gt.f32.partialorder %v505_v14, 0.0 }
  0xba   : > { %vm525_vm1 = vcmp.gt.f32.partialorder %v487_v13, 0.0  ;;  %v543_v15 = vmul.f32 %v1460_v6, %v487_v13  ;;  %v566_v28 = vsel %vm532_vm2, %v505_v14, %v550_v23 }
  0xbb   : > { %v457_v16 = vpop.f32.mrf.mxu2 }
  0xbc   : > { %v559_v18 = vsel %vm525_vm1, %v487_v13, %v543_v15  ;;  %v458_v19 = vadd.f32 %v1454_v0, %v457_v16  ;;  %v506_v20 = vpop.f32.mrf.mxu3 }
  0xbd   : > { %v1074_v21 = vpack.c.bf16 %v559_v18, %v558_v17  ;;  %v440_v22 = vpop.f32.mrf.mxu0 }
  0xbe   : > { %v507_v24 = vadd.f32 %v506_v20, %v458_v19  ;;  %v489_v25 = vpop.f32.mrf.mxu1  ;;  %v441_v27 = vadd.f32 %v1454_v0, %v440_v22 }
  0xbf   : > { %1075 = vst [vmem:[%s1469_s12] sm:$0xff] %v1074_v21  }
  0xc0   : > { %vm533_vm3 = vcmp.gt.f32.partialorder %v507_v24, 0.0  ;;  %v551_v26 = vmul.f32 %v1460_v6, %v507_v24  ;;  %v490_v32 = vadd.f32 %v489_v25, %v441_v27 }
  0xc2   : > { %v567_v29 = vsel %vm533_vm3, %v507_v24, %v551_v26  ;;  %v544_v38 = vmul.f32 %v1460_v6, %v490_v32  ;;  %vm526_vm4 = vcmp.gt.f32.partialorder %v490_v32, 0.0 }
  0xc3   : > { %v1094_v30 = vpack.c.bf16 %v567_v29, %v566_v28  ;;  %v460_v31 = vpop.f32.mrf.mxu2 }
  0xc4   : > { %v509_v33 = vpop.f32.mrf.mxu3  ;;  %v461_v35 = vadd.f32 %v1454_v0, %v460_v31  ;;  %v560_v43 = vsel %vm526_vm4, %v490_v32, %v544_v38 }
  0xc5   : > { %1114 = vst [vmem:[%s1469_s12 + $0x20] sm:$0xff] %v1094_v30   ;;  %v442_v34 = vpop.f32.mrf.mxu0 }
  0xc6   : > { %v443_v36 = vadd.f32 %v1454_v0, %v442_v34  ;;  %v491_v37 = vpop.f32.mrf.mxu1  ;;  %v510_v40 = vadd.f32 %v509_v33, %v461_v35 }
  0xc8   : > { %v492_v39 = vadd.f32 %v491_v37, %v443_v36  ;;  %v552_v49 = vmul.f32 %v1460_v6, %v510_v40  ;;  %vm534_vm6 = vcmp.gt.f32.partialorder %v510_v40, 0.0 }
  0xca   : > { %vm527_vm5 = vcmp.gt.f32.partialorder %v492_v39, 0.0  ;;  %v545_v41 = vmul.f32 %v1460_v6, %v492_v39  ;;  %v568_v54 = vsel %vm534_vm6, %v510_v40, %v552_v49 }
  0xcb   : > { %v462_v42 = vpop.f32.mrf.mxu2 }
  0xcc   : > { %v561_v44 = vsel %vm527_vm5, %v492_v39, %v545_v41  ;;  %v463_v45 = vadd.f32 %v1454_v0, %v462_v42  ;;  %v511_v46 = vpop.f32.mrf.mxu3 }
  0xcd   : > { %v1079_v47 = vpack.c.bf16 %v561_v44, %v560_v43  ;;  %v445_v48 = vpop.f32.mrf.mxu0 }
  0xce   : > { %v512_v50 = vadd.f32 %v511_v46, %v463_v45  ;;  %v494_v51 = vpop.f32.mrf.mxu1  ;;  %v446_v53 = vadd.f32 %v1454_v0, %v445_v48 }
  0xcf   : > { %1111 = vst [vmem:[%s1469_s12 + $0x8] sm:$0xff] %v1079_v47  }
  0xd0   : > { %vm535_vm7 = vcmp.gt.f32.partialorder %v512_v50, 0.0  ;;  %v553_v52 = vmul.f32 %v1460_v6, %v512_v50  ;;  %v495_v58 = vadd.f32 %v494_v51, %v446_v53 }
  0xd2   : > { %v569_v55 = vsel %vm535_vm7, %v512_v50, %v553_v52  ;;  %v546_v1 = vmul.f32 %v1460_v6, %v495_v58  ;;  %vm528_vm8 = vcmp.gt.f32.partialorder %v495_v58, 0.0 }
  0xd3   : > { %v1099_v56 = vpack.c.bf16 %v569_v55, %v568_v54  ;;  %v465_v57 = vpop.f32.mrf.mxu2 }
  0xd4   : > { %v514_v59 = vpop.f32.mrf.mxu3  ;;  %v466_v61 = vadd.f32 %v1454_v0, %v465_v57  ;;  %v562_v7 = vsel %vm528_vm8, %v495_v58, %v546_v1 }
  0xd5   : > { %1115 = vst [vmem:[%s1469_s12 + $0x28] sm:$0xff] %v1099_v56   ;;  %v447_v60 = vpop.f32.mrf.mxu0 }
  0xd6   : > { %v448_v62 = vadd.f32 %v1454_v0, %v447_v60  ;;  %v496_v63 = vpop.f32.mrf.mxu1  ;;  %v515_v3 = vadd.f32 %v514_v59, %v466_v61 }
  0xd8   : > { %v497_v2 = vadd.f32 %v496_v63, %v448_v62  ;;  %v554_v13 = vmul.f32 %v1460_v6, %v515_v3  ;;  %vm536_vm10 = vcmp.gt.f32.partialorder %v515_v3, 0.0 }
  0xda   : > { %vm529_vm9 = vcmp.gt.f32.partialorder %v497_v2, 0.0  ;;  %v547_v4 = vmul.f32 %v1460_v6, %v497_v2  ;;  %v570_v18 = vsel %vm536_vm10, %v515_v3, %v554_v13 }
  0xdb   : > { %v467_v5 = vpop.f32.mrf.mxu2 }
  0xdc   : > { %v563_v8 = vsel %vm529_vm9, %v497_v2, %v547_v4  ;;  %v468_v9 = vadd.f32 %v1454_v0, %v467_v5  ;;  %v516_v10 = vpop.f32.mrf.mxu3 }
  0xdd   : > { %v1084_v11 = vpack.c.bf16 %v563_v8, %v562_v7  ;;  %v450_v12 = vpop.f32.mrf.mxu0 }
  0xde   : > { %v517_v14 = vadd.f32 %v516_v10, %v468_v9  ;;  %v499_v15 = vpop.f32.mrf.mxu1  ;;  %v451_v17 = vadd.f32 %v1454_v0, %v450_v12 }
  0xdf   : > { %1112 = vst [vmem:[%s1469_s12 + $0x10] sm:$0xff] %v1084_v11  }
  0xe0   : > { %vm537_vm11 = vcmp.gt.f32.partialorder %v517_v14, 0.0  ;;  %v555_v16 = vmul.f32 %v1460_v6, %v517_v14  ;;  %v500_v22 = vadd.f32 %v499_v15, %v451_v17 }
  0xe2   : > { %v571_v19 = vsel %vm537_vm11, %v517_v14, %v555_v16  ;;  %v548_v28 = vmul.f32 %v1460_v6, %v500_v22  ;;  %vm530_vm12 = vcmp.gt.f32.partialorder %v500_v22, 0.0 }
  0xe3   : > { %v1104_v20 = vpack.c.bf16 %v571_v19, %v570_v18  ;;  %v470_v21 = vpop.f32.mrf.mxu2 }
  0xe4   : > { %v519_v23 = vpop.f32.mrf.mxu3  ;;  %v471_v25 = vadd.f32 %v1454_v0, %v470_v21  ;;  %v564_v33 = vsel %vm530_vm12, %v500_v22, %v548_v28 }
  0xe5   : > { %1116 = vst [vmem:[%s1469_s12 + $0x30] sm:$0xff] %v1104_v20   ;;  %v452_v24 = vpop.f32.mrf.mxu0 }
  0xe6   : > { %v453_v26 = vadd.f32 %v1454_v0, %v452_v24  ;;  %v501_v27 = vpop.f32.mrf.mxu1  ;;  %v520_v30 = vadd.f32 %v519_v23, %v471_v25 }
  0xe8   : > { %v502_v29 = vadd.f32 %v501_v27, %v453_v26  ;;  %v556_v38 = vmul.f32 %v1460_v6, %v520_v30  ;;  %vm538_vm14 = vcmp.gt.f32.partialorder %v520_v30, 0.0 }
  0xea   : > { %vm531_vm13 = vcmp.gt.f32.partialorder %v502_v29, 0.0  ;;  %v549_v31 = vmul.f32 %v1460_v6, %v502_v29  ;;  %v572_v41 = vsel %vm538_vm14, %v520_v30, %v556_v38 }
  0xeb   : > { %v472_v32 = vpop.f32.mrf.mxu2 }
  0xec   : > { %v565_v34 = vsel %vm531_vm13, %v502_v29, %v549_v31  ;;  %v473_v35 = vadd.f32 %v1454_v0, %v472_v32  ;;  %v521_v37 = vpop.f32.mrf.mxu3 }
  0xed   : > { %v1089_v36 = vpack.c.bf16 %v565_v34, %v564_v33 }
  0xee   : > { %v522_v39 = vadd.f32 %v521_v37, %v473_v35 }
  0xef   : > { %1113 = vst [vmem:[%s1469_s12 + $0x18] sm:$0xff] %v1089_v36  }
  0xf0   : > { %vm539_vm15 = vcmp.gt.f32.partialorder %v522_v39, 0.0  ;;  %v557_v40 = vmul.f32 %v1460_v6, %v522_v39 }
  0xf1   : > { %612 = sbr.rel (!%p1357_p4) target bundleno = 294 (0x126), region = 36 }
  0xf2   : > { %v573_v42 = vsel %vm539_vm15, %v522_v39, %v557_v40 }
  0xf3   : > { %v1109_v43 = vpack.c.bf16 %v573_v42, %v572_v41 }
  0xf5   : > { %1117 = vst [vmem:[%s1469_s12 + $0x38] sm:$0xff] %v1109_v43  }
  0xf6   : > { %s1618_s24 = smov (!%p615_p8, %s614_s24), 16 }
  0xf7   : > { %s1020_s29 = sshll.u32 %s1618_s24, 2 }
  0xf8   : > { %p1023_p9 = scmp.eq.s32.totalorder %s1020_s29, 0 }
  0xf9   : > { %s1517_s30 = sshrl.u32 (!%p1023_p9), %s1618_s24, 4 }
  0xfa   : > { %623 = sbr.rel (%p1023_p9) target bundleno = 294 (0x126), region = 40  ;;  %p1024_p10 = scmp.le.s32.totalorder (!%p1023_p9), %s1517_s30, 0 }
  0xff   : > { %838 = sbr.rel (%p1024_p10) target bundleno = 277 (0x115), region = 112  ;;  %s1609_s15 = smov (!%p1024_p10), %s1511_s28 }
 0x100   : > { %s1610_s20 = smov (!%p1024_p10), %s1469_s12  ;;  %s1526_s6 = smov (!%p1024_p10), 0  }
 0x101   : > { %s1528_s4 = smov (!%p1024_p10), 0  }
 0x104 LB: >> { %v640_v0 = vld [vmem:[%s1286_s20] sm:$0xf]  ;;  %v642_v6 = vld [vmem:[%s1286_s20 + $0x4] sm:$0xf]  ;;  %v644_v44 = vld [vmem:[%s1286_s20 + $0x8] sm:$0xf]  ;;  %s1294_s4 = sphi %s1528_s4, %s634_s4   ;;  %s1290_s6 = sphi %s1526_s6, %s1613_s6   ;;  %s1286_s20 = sphi %s1610_s20, %s1612_s20   ;;  %s1282_s15 = sphi %s1609_s15, %s1611_s15  }
 0x105   : >> { %641 = vst [vmem:[%s1282_s15] sm:$0xf] %v640_v0  ;;  %v646_v45 = vld [vmem:[%s1286_s20 + $0xc] sm:$0xf]  ;;  %s672_s5 = sadd.s32 1, %s1290_s6  ;;  %v648_v46 = vld [vmem:[%s1286_s20 + $0x10] sm:$0xf] }
 0x106   : >> { %643 = vst [vmem:[%s1282_s15 + $0x4] sm:$0xf] %v642_v6  ;;  %v650_v47 = vld [vmem:[%s1286_s20 + $0x14] sm:$0xf]  ;;  %p673_p11 = scmp.ge.s32.totalorder %s672_s5, %s1517_s30  ;;  %v652_v48 = vld [vmem:[%s1286_s20 + $0x18] sm:$0xf] }
 0x107   : >> { %645 = vst [vmem:[%s1282_s15 + $0x8] sm:$0xf] %v644_v44  ;;  %v654_v49 = vld [vmem:[%s1286_s20 + $0x1c] sm:$0xf]  ;;  %v656_v50 = vld [vmem:[%s1286_s20 + $0x20] sm:$0xf] }
 0x108   : >> { %647 = vst [vmem:[%s1282_s15 + $0xc] sm:$0xf] %v646_v45  ;;  %v658_v51 = vld [vmem:[%s1286_s20 + $0x24] sm:$0xf]  ;;  %s1620_s5 = smov (%p673_p11, %s672_s5), 0  ;;  %s634_s4 = sadd.s32 1, %s1294_s4  }
 0x109   : >> { %649 = vst [vmem:[%s1282_s15 + $0x10] sm:$0xf] %v648_v46  ;;  %v660_v52 = vld [vmem:[%s1286_s20 + $0x28] sm:$0xf]  ;;  %v662_v53 = vld [vmem:[%s1286_s20 + $0x2c] sm:$0xf]  ;;  %p633_p12 = scmp.ge.s32.totalorder %s634_s4, %s1517_s30  ;;  %s1613_s6 = smov %s1620_s5 }
 0x10a   : >> { %651 = vst [vmem:[%s1282_s15 + $0x14] sm:$0xf] %v650_v47  ;;  %s1025_s7 = sshll.u32 %s1620_s5, 6  ;;  %v664_v54 = vld [vmem:[%s1286_s20 + $0x30] sm:$0xf] }
 0x10b   : >> { %653 = vst [vmem:[%s1282_s15 + $0x18] sm:$0xf] %v652_v48  ;;  %s677_s8 = scalar_lea.vmem %s1469_s12, %s1025_s7 [#allocation2]   ;;  %s678_s9 = scalar_lea.vmem %s1511_s28, %s1025_s7   ;;  %v666_v55 = vld [vmem:[%s1286_s20 + $0x34] sm:$0xf]  ;;  %v668_v56 = vld [vmem:[%s1286_s20 + $0x38] sm:$0xf] }
 0x10c   : >> { %655 = vst [vmem:[%s1282_s15 + $0x1c] sm:$0xf] %v654_v49  ;;  %v670_v57 = vld [vmem:[%s1286_s20 + $0x3c] sm:$0xf]  ;;  %s1612_s20 = smov %s677_s8 }
 0x10d   : >> { %657 = vst [vmem:[%s1282_s15 + $0x20] sm:$0xf] %v656_v50 }
 0x10e   : >> { %659 = vst [vmem:[%s1282_s15 + $0x24] sm:$0xf] %v658_v51 }
 0x10f   : >> { %661 = vst [vmem:[%s1282_s15 + $0x28] sm:$0xf] %v660_v52 }
 0x110   : >> { %663 = vst [vmem:[%s1282_s15 + $0x2c] sm:$0xf] %v662_v53  ;;  %636 = sbr.rel (!%p633_p12) target bundleno = 260 (0x104), region = 118 }
 0x111   : >> { %665 = vst [vmem:[%s1282_s15 + $0x30] sm:$0xf] %v664_v54 }
 0x112   : >> { %667 = vst [vmem:[%s1282_s15 + $0x34] sm:$0xf] %v666_v55 }
 0x113   : >> { %669 = vst [vmem:[%s1282_s15 + $0x38] sm:$0xf] %v668_v56 }
 0x114   : >> { %671 = vst [vmem:[%s1282_s15 + $0x3c] sm:$0xf] %v670_v57  ;;  %s1611_s15 = smov %s678_s9 }
 0x115 PF: > { %s1586_s10 = sand.u32 15, %s1618_s24   ;;  %s1069_s11 = sshll.u32 %s1517_s30, 6 }
 0x116   : > { %s683_s14 = scalar_lea.vmem %s1469_s12, %s1069_s11 [#allocation2]   ;;  %s685_s17 = scalar_lea.vmem %s1511_s28, %s1069_s11  }
 0x117   : > { %p1030_p13 = scmp.le.s32.totalorder %s1586_s10, 0 }
 0x118   : > { %s1296_s18 = smov (!%p1030_p13), %s685_s17   ;;  %s1300_s21 = smov (!%p1030_p13), %s683_s14  }
 0x119   : > { %852 = sbr.rel (%p1030_p13) target bundleno = 294 (0x126), region = 123  ;;  %s1304_s22 = smov (!%p1030_p13), 0  }
 0x11a   : > { %s1308_s23 = smov (!%p1030_p13), 0  }
 0x11e LB: >> { %v695_v58 = vld [vmem:[%s1302_s21] sm:$0xf]  ;;  %s697_s24 = sadd.s32 1, %s1306_s22  ;;  %s689_s23 = sadd.s32 1, %s1310_s23   ;;  %s1310_s23 = sphi %s1308_s23, %s689_s23   ;;  %s1306_s22 = sphi %s1304_s22, %s1305_s22   ;;  %s1302_s21 = sphi %s1300_s21, %s702_s21   ;;  %s1298_s18 = sphi %s1296_s18, %s703_s18  }
 0x11f   : >> { %696 = vst [vmem:[%s1298_s18] sm:$0xf] %v695_v58  ;;  %p698_p0 = scmp.ge.s32.totalorder %s697_s24, %s1586_s10  ;;  %p688_p1 = scmp.ge.s32.totalorder %s689_s23, %s1586_s10 }
 0x121   : >> { %s1622_s24 = smov (%p698_p0, %s697_s24), 0  ;;  %691 = sbr.rel (!%p688_p1) target bundleno = 286 (0x11e), region = 129 }
 0x122   : >> { %s1031_s12 = sshll.u32 %s1622_s24, 2  ;;  %s1305_s22 = smov %s1622_s24  }
 0x123   : >> { %s702_s21 = scalar_lea.vmem %s683_s14, %s1031_s12 [#allocation2]   ;;  %s703_s18 = scalar_lea.vmem %s685_s17, %s1031_s12  }
 0x126 PF: > { %p10_p2 = scmp.ge.s32.totalorder %s1347_s16, 4   ;;  %s1614_s12 = smov %s1274_s13 }
 0x127   : > { %s1615_s13 = smov %s1355_s19  ;;  %s1616_s14 = smov %s1347_s16 }
 0x128   :  { %12 = sbr.rel (!%p10_p2) target bundleno = 2 (0x2), region = 140 }

// kernel: rnet_forward.8
= control target key start
LH: loop header
LB: loop body
LE: loop exit
PB: predicated region body
PF: predicated region fallthrough
CT: control target
= control target key end

     0   :  { %s1221_s12 = smov 0   ;;  %s1223_s13 = smov 0   ;;  %s1452_s0 = inlined_call_operand.vmem [shape: bf16[162,256], index: 0, kind: input, shape index: {}]   ;;  %s1453_s1 = inlined_call_operand.vmem [shape: bf16[256,128], index: 1, kind: input, shape index: {}]   ;;  %s1454_s2 = inlined_call_operand.vmem [shape: f32[2,128], index: 2, kind: input, shape index: {}]   ;;  %s1455_s3 = inlined_call_operand.vmem [shape: bf16[162,128], index: 3, kind: output, shape index: {}]  }
   0x1   :  { %s1225_s14 = smov 0  }
   0x2 LB: > { %s1234_s15 = sadd.s32 4294967295, %s1167_s14   ;;  %s1236_s16 = sadd.s32 1, %s1167_s14   ;;  %s1167_s14 = sphi %s1225_s14, %s1463_s14   ;;  %s1163_s13 = sphi %s1223_s13, %s1462_s13   ;;  %s1159_s12 = sphi %s1221_s12, %s1461_s12  }
   0x3   : > { %s85_s17 = ssub.s32 %s1167_s14, %s1236_s16  ;;  %s88_s18 = sadd.s32 1, %s1163_s13 }
   0x4   : > { %p86_p0 = scmp.eq.s32.totalorder %s85_s17, 0  ;;  %p98_p1 = scmp.ne.s32.totalorder %s1163_s13, %s1159_s12 }
   0x5   : > { %p99_p2 = scmp.eq.s32.totalorder %s1234_s15, 1  ;;  %p807_p3 = scmp.ge.s32.totalorder %s1167_s14, 1 }
   0x6   : > { %s1244_s19 = scalar_select %p86_p0, %s1163_s13, %s88_s18  }
   0x7   : > { %p1246_p4 = por %p99_p2, %p98_p1  ;;  %p149_p5 = scmp.lt.s32.totalorder %s1167_s14, 3 }
   0x9   : > { %p150_p6 = pnand %p807_p3, %p149_p5 }
   0xa   : > { %s1269_s6 = smul.u32 (!%p150_p6), 12, %s1234_s15  ;;  %s175_s22 = sand.u32 (!%p150_p6), 1, %s1159_s12  }
   0xb   : > { %153 = sbr.rel (%p150_p6) target bundleno = 289 (0x121), region = 32 }
   0xc   : > { %p184_p7 = scmp.lt.s32.totalorder (!%p150_p6), %s1269_s6, 20  ;;  %s1015_s23 = smul.u32 (!%p150_p6), 48, %s175_s22 }
   0xe   : > { %s1350_s12 = scalar_lea.vmem (!%p150_p6), [#allocation2], %s1015_s23  }
  0x10   : > { %v954_v0 = vld [vmem:[%s1453_s1 + $0x38] sm:$0xff]  ;;  %v953_v2 = vld [vmem:[%s1453_s1 + $0x30] sm:$0xff]  ;;  %v952_v4 = vld [vmem:[%s1453_s1 + $0x28] sm:$0xff]  ;;  %s185_s21 = scalar_select %p184_p7, %s1269_s6, 20 }
  0x11   : > { %v962_v1 = vld [vmem:[%s1453_s1 + $0x78] sm:$0xff]  ;;  %402 = vmatpush.bf16.msra.mxu0 %v954_v0  ;;  %999 = vmatpush.bf16.msra.mxu2 %v954_v0  ;;  %v961_v3 = vld [vmem:[%s1453_s1 + $0x70] sm:$0xff]  ;;  %v960_v5 = vld [vmem:[%s1453_s1 + $0x68] sm:$0xff]  ;;  %s550_s24 = ssub.s32 (%p1246_p4), 21, %s1269_s6  ;;  %s963_s25 = smul.u32 (%p1246_p4), 48, %s1234_s15 }
  0x12   : > { %441 = vmatpush.bf16.msra.mxu1 %v962_v1  ;;  %1007 = vmatpush.bf16.msra.mxu3 %v962_v1  ;;  %v951_v6 = vld [vmem:[%s1453_s1 + $0x20] sm:$0xff]  ;;  %v950_v8 = vld [vmem:[%s1453_s1 + $0x18] sm:$0xff]  ;;  %v949_v10 = vld [vmem:[%s1453_s1 + $0x10] sm:$0xff]  ;;  %s934_s26 = sshll.u32 %s185_s21, 3  ;;  %p551_p8 = scmp.lt.s32.totalorder (%p1246_p4), %s550_s24, 12 }
  0x13   : > { %v959_v7 = vld [vmem:[%s1453_s1 + $0x60] sm:$0xff]  ;;  %v958_v9 = vld [vmem:[%s1453_s1 + $0x58] sm:$0xff]  ;;  %v957_v11 = vld [vmem:[%s1453_s1 + $0x50] sm:$0xff]  ;;  %s1297_s4 = scalar_lea.vmem %s1452_s0, %s934_s26  ;;  %s1382_s28 = scalar_lea.vmem (%p1246_p4), %s1455_s3, %s963_s25  }
  0x14   : > { %v948_v12 = vld [vmem:[%s1453_s1 + $0x8] sm:$0xff]  ;;  %v947_v14 = vld [vmem:[%s1453_s1] sm:$0xff]  ;;  %v836_v18 = vld [vmem:[%s1297_s4 + $0x30] sm:$0xf] }
  0x15   : > { %403 = vmatpush.bf16.msra.mxu0 %v953_v2  ;;  %1000 = vmatpush.bf16.msra.mxu2 %v953_v2  ;;  %v956_v13 = vld [vmem:[%s1453_s1 + $0x48] sm:$0xff]  ;;  %v955_v15 = vld [vmem:[%s1453_s1 + $0x40] sm:$0xff]  ;;  %v942_v19 = vld [vmem:[%s1297_s4 + $0x34] sm:$0xf0] }
  0x16   : > { %442 = vmatpush.bf16.msra.mxu1 %v961_v3  ;;  %1008 = vmatpush.bf16.msra.mxu3 %v961_v3  ;;  %v812_v16 = vld [vmem:[%s1297_s4] sm:$0xf]  ;;  %v936_v17 = vld [vmem:[%s1297_s4 + $0x4] sm:$0xf0]  ;;  %v935_v20 = vld [vmem:[%s1297_s4 + $0x4] sm:$0xf]  ;;  %v837_v25 = vor.u32 %v942_v19, %v836_v18 }
  0x17   : > { %v814_v21 = vld [vmem:[%s1297_s4 + $0x8] sm:$0xf0]  ;;  %v941_v22 = vld [vmem:[%s1297_s4 + $0x34] sm:$0xf]  ;;  %v838_v23 = vld [vmem:[%s1297_s4 + $0x38] sm:$0xf0]  ;;  %v813_v24 = vor.u32 %v936_v17, %v812_v16 }
  0x18   : > { %v817_v26 = vor.u32 %v935_v20, %v814_v21  ;;  %v841_v27 = vor.u32 %v941_v22, %v838_v23  ;;  %v820_v28 = vld [vmem:[%s1297_s4 + $0x10] sm:$0xf]  ;;  %v938_v29 = vld [vmem:[%s1297_s4 + $0x14] sm:$0xf0]  ;;  %v844_v30 = vld [vmem:[%s1297_s4 + $0x40] sm:$0xf] }
  0x19   : > { %404 = vmatpush.bf16.msra.mxu0 %v952_v4  ;;  %1001 = vmatpush.bf16.msra.mxu2 %v952_v4  ;;  %v944_v31 = vld [vmem:[%s1297_s4 + $0x44] sm:$0xf0]  ;;  %v937_v32 = vld [vmem:[%s1297_s4 + $0x14] sm:$0xf]  ;;  %v822_v33 = vld [vmem:[%s1297_s4 + $0x18] sm:$0xf0]  ;;  %v821_v36 = vor.u32 %v938_v29, %v820_v28 }
  0x1a   : > { %443 = vmatpush.bf16.msra.mxu1 %v960_v5  ;;  %1009 = vmatpush.bf16.msra.mxu3 %v960_v5  ;;  %v943_v34 = vld [vmem:[%s1297_s4 + $0x44] sm:$0xf]  ;;  %v846_v35 = vld [vmem:[%s1297_s4 + $0x48] sm:$0xf0]  ;;  %v845_v37 = vor.u32 %v944_v31, %v844_v30  ;;  %v825_v38 = vor.u32 %v937_v32, %v822_v33  ;;  %v828_v40 = vld [vmem:[%s1297_s4 + $0x20] sm:$0xf] }
  0x1b   : > { %v849_v39 = vor.u32 %v943_v34, %v846_v35  ;;  %v940_v41 = vld [vmem:[%s1297_s4 + $0x24] sm:$0xf0]  ;;  %v852_v42 = vld [vmem:[%s1297_s4 + $0x50] sm:$0xf]  ;;  %v946_v43 = vld [vmem:[%s1297_s4 + $0x54] sm:$0xf0] }
  0x1c   : > { %v939_v44 = vld [vmem:[%s1297_s4 + $0x24] sm:$0xf]  ;;  %v830_v45 = vld [vmem:[%s1297_s4 + $0x28] sm:$0xf0]  ;;  %v945_v46 = vld [vmem:[%s1297_s4 + $0x54] sm:$0xf]  ;;  %v829_v48 = vor.u32 %v940_v41, %v828_v40  ;;  %v853_v49 = vor.u32 %v946_v43, %v852_v42 }
  0x1d   : > { %405 = vmatpush.bf16.msra.mxu0 %v951_v6  ;;  %1002 = vmatpush.bf16.msra.mxu2 %v951_v6  ;;  %v854_v47 = vld [vmem:[%s1297_s4 + $0x58] sm:$0xf0]  ;;  %v833_v50 = vor.u32 %v939_v44, %v830_v45  ;;  %v1335_v52 = vld [vmem:[%s1454_s2] ss:$0 sm:$0xff]  ;;  %v1341_v58 = vld [vmem:[%s1454_s2 + $0x1] ss:$0 sm:$0xff] }
  0x1e   : > { %444 = vmatpush.bf16.msra.mxu1 %v959_v7  ;;  %1010 = vmatpush.bf16.msra.mxu3 %v959_v7  ;;  %v857_v51 = vor.u32 %v945_v46, %v854_v47 }
  0x21   : > { %406 = vmatpush.bf16.msra.mxu0 %v950_v8  ;;  %1003 = vmatpush.bf16.msra.mxu2 %v950_v8 }
  0x22   : > { %445 = vmatpush.bf16.msra.mxu1 %v958_v9  ;;  %1011 = vmatpush.bf16.msra.mxu3 %v958_v9 }
  0x25   : > { %407 = vmatpush.bf16.msra.mxu0 %v949_v10  ;;  %1004 = vmatpush.bf16.msra.mxu2 %v949_v10 }
  0x26   : > { %446 = vmatpush.bf16.msra.mxu1 %v957_v11  ;;  %1012 = vmatpush.bf16.msra.mxu3 %v957_v11 }
  0x29   : > { %408 = vmatpush.bf16.msra.mxu0 %v948_v12  ;;  %1005 = vmatpush.bf16.msra.mxu2 %v948_v12 }
  0x2a   : > { %447 = vmatpush.bf16.msra.mxu1 %v956_v13  ;;  %1013 = vmatpush.bf16.msra.mxu3 %v956_v13 }
  0x2d   : > { %409 = vmatpush.bf16.msra.mxu0 %v947_v14  ;;  %1006 = vmatpush.bf16.msra.mxu2 %v947_v14 }
  0x2e   : > { %448 = vmatpush.bf16.msra.mxu1 %v955_v15  ;;  %1014 = vmatpush.bf16.msra.mxu3 %v955_v15 }
  0x30   : > { %410 = vmatmul.bf16.vlgmr.msra.gmra.mxu0 %v813_v24  ;;  %425 = vmatmul.bf16.vlgmr.msra.gmra.mxu2 %v837_v25 }
  0x31   : > { %449 = vmatmul.bf16.vlgmr.msra.gmra.mxu1 %v817_v26  ;;  %464 = vmatmul.bf16.vlgmr.msra.gmra.mxu3 %v841_v27 }
  0x40   : > { %415 = vmatmul.bf16.gmra.mxu0 %v821_v36  ;;  %430 = vmatmul.bf16.gmra.mxu2 %v845_v37 }
  0x41   : > { %454 = vmatmul.bf16.gmra.mxu1 %v825_v38  ;;  %469 = vmatmul.bf16.gmra.mxu3 %v849_v39 }
  0x50   : > { %420 = vmatmul.bf16.gmra.mxu0 %v829_v48  ;;  %435 = vmatmul.bf16.gmra.mxu2 %v853_v49 }
  0x51   : > { %459 = vmatmul.bf16.gmra.mxu1 %v833_v50  ;;  %474 = vmatmul.bf16.gmra.mxu3 %v857_v51 }
  0xad   : > { %v411_v53 = vpop.f32.mrf.mxu0 }
  0xae   : > { %v450_v54 = vpop.f32.mrf.mxu1  ;;  %v412_v55 = vadd.f32 %v1335_v52, %v411_v53 }
  0xb0   : > { %v451_v57 = vadd.f32 %v450_v54, %v412_v55 }
  0xb2   : > { %v494_v0 = vmul.f32 %v1341_v58, %v451_v57  ;;  %vm480_vm0 = vcmp.gt.f32.partialorder %v451_v57, 0.0 }
  0xb3   : > { %v426_v56 = vpop.f32.mrf.mxu2 }
  0xb4   : > { %v465_v59 = vpop.f32.mrf.mxu3  ;;  %v427_v61 = vadd.f32 %v1335_v52, %v426_v56  ;;  %v506_v5 = vsel %vm480_vm0, %v451_v57, %v494_v0 }
  0xb5   : > { %v413_v60 = vpop.f32.mrf.mxu0 }
  0xb6   : > { %v414_v62 = vadd.f32 %v1335_v52, %v413_v60  ;;  %v452_v63 = vpop.f32.mrf.mxu1  ;;  %v466_v2 = vadd.f32 %v465_v59, %v427_v61 }
  0xb8   : > { %v453_v1 = vadd.f32 %v452_v63, %v414_v62  ;;  %v500_v11 = vmul.f32 %v1341_v58, %v466_v2  ;;  %vm486_vm2 = vcmp.gt.f32.partialorder %v466_v2, 0.0 }
  0xba   : > { %vm481_vm1 = vcmp.gt.f32.partialorder %v453_v1, 0.0  ;;  %v495_v3 = vmul.f32 %v1341_v58, %v453_v1  ;;  %v512_v16 = vsel %vm486_vm2, %v466_v2, %v500_v11 }
  0xbb   : > { %v428_v4 = vpop.f32.mrf.mxu2 }
  0xbc   : > { %v507_v6 = vsel %vm481_vm1, %v453_v1, %v495_v3  ;;  %v429_v7 = vadd.f32 %v1335_v52, %v428_v4  ;;  %v467_v8 = vpop.f32.mrf.mxu3 }
  0xbd   : > { %v967_v9 = vpack.c.bf16 %v507_v6, %v506_v5  ;;  %v416_v10 = vpop.f32.mrf.mxu0 }
  0xbe   : > { %v468_v12 = vadd.f32 %v467_v8, %v429_v7  ;;  %v455_v13 = vpop.f32.mrf.mxu1  ;;  %v417_v15 = vadd.f32 %v1335_v52, %v416_v10 }
  0xbf   : > { %968 = vst [vmem:[%s1350_s12] sm:$0xff] %v967_v9  }
  0xc0   : > { %vm487_vm3 = vcmp.gt.f32.partialorder %v468_v12, 0.0  ;;  %v501_v14 = vmul.f32 %v1341_v58, %v468_v12  ;;  %v456_v20 = vadd.f32 %v455_v13, %v417_v15 }
  0xc2   : > { %v513_v17 = vsel %vm487_vm3, %v468_v12, %v501_v14  ;;  %v496_v26 = vmul.f32 %v1341_v58, %v456_v20  ;;  %vm482_vm4 = vcmp.gt.f32.partialorder %v456_v20, 0.0 }
  0xc3   : > { %v982_v18 = vpack.c.bf16 %v513_v17, %v512_v16  ;;  %v431_v19 = vpop.f32.mrf.mxu2 }
  0xc4   : > { %v470_v21 = vpop.f32.mrf.mxu3  ;;  %v432_v23 = vadd.f32 %v1335_v52, %v431_v19  ;;  %v508_v31 = vsel %vm482_vm4, %v456_v20, %v496_v26 }
  0xc5   : > { %996 = vst [vmem:[%s1350_s12 + $0x18] sm:$0xff] %v982_v18   ;;  %v418_v22 = vpop.f32.mrf.mxu0 }
  0xc6   : > { %v419_v24 = vadd.f32 %v1335_v52, %v418_v22  ;;  %v457_v25 = vpop.f32.mrf.mxu1  ;;  %v471_v28 = vadd.f32 %v470_v21, %v432_v23 }
  0xc8   : > { %v458_v27 = vadd.f32 %v457_v25, %v419_v24  ;;  %v502_v37 = vmul.f32 %v1341_v58, %v471_v28  ;;  %vm488_vm6 = vcmp.gt.f32.partialorder %v471_v28, 0.0 }
  0xca   : > { %vm483_vm5 = vcmp.gt.f32.partialorder %v458_v27, 0.0  ;;  %v497_v29 = vmul.f32 %v1341_v58, %v458_v27  ;;  %v514_v42 = vsel %vm488_vm6, %v471_v28, %v502_v37 }
  0xcb   : > { %v433_v30 = vpop.f32.mrf.mxu2 }
  0xcc   : > { %v509_v32 = vsel %vm483_vm5, %v458_v27, %v497_v29  ;;  %v434_v33 = vadd.f32 %v1335_v52, %v433_v30  ;;  %v472_v34 = vpop.f32.mrf.mxu3 }
  0xcd   : > { %v972_v35 = vpack.c.bf16 %v509_v32, %v508_v31  ;;  %v421_v36 = vpop.f32.mrf.mxu0 }
  0xce   : > { %v473_v38 = vadd.f32 %v472_v34, %v434_v33  ;;  %v460_v39 = vpop.f32.mrf.mxu1  ;;  %v422_v41 = vadd.f32 %v1335_v52, %v421_v36 }
  0xcf   : > { %994 = vst [vmem:[%s1350_s12 + $0x8] sm:$0xff] %v972_v35  }
  0xd0   : > { %vm489_vm7 = vcmp.gt.f32.partialorder %v473_v38, 0.0  ;;  %v503_v40 = vmul.f32 %v1341_v58, %v473_v38  ;;  %v461_v46 = vadd.f32 %v460_v39, %v422_v41 }
  0xd2   : > { %v515_v43 = vsel %vm489_vm7, %v473_v38, %v503_v40  ;;  %v498_v53 = vmul.f32 %v1341_v58, %v461_v46  ;;  %vm484_vm8 = vcmp.gt.f32.partialorder %v461_v46, 0.0 }
  0xd3   : > { %v987_v44 = vpack.c.bf16 %v515_v43, %v514_v42  ;;  %v436_v45 = vpop.f32.mrf.mxu2 }
  0xd4   : > { %v475_v47 = vpop.f32.mrf.mxu3  ;;  %v437_v49 = vadd.f32 %v1335_v52, %v436_v45  ;;  %v510_v59 = vsel %vm484_vm8, %v461_v46, %v498_v53 }
  0xd5   : > { %997 = vst [vmem:[%s1350_s12 + $0x20] sm:$0xff] %v987_v44   ;;  %v423_v48 = vpop.f32.mrf.mxu0 }
  0xd6   : > { %v424_v50 = vadd.f32 %v1335_v52, %v423_v48  ;;  %v462_v51 = vpop.f32.mrf.mxu1  ;;  %v476_v55 = vadd.f32 %v475_v47, %v437_v49 }
  0xd8   : > { %v463_v54 = vadd.f32 %v462_v51, %v424_v50  ;;  %v504_v0 = vmul.f32 %v1341_v58, %v476_v55  ;;  %vm490_vm10 = vcmp.gt.f32.partialorder %v476_v55, 0.0 }
  0xda   : > { %vm485_vm9 = vcmp.gt.f32.partialorder %v463_v54, 0.0  ;;  %v499_v56 = vmul.f32 %v1341_v58, %v463_v54  ;;  %v516_v3 = vsel %vm490_vm10, %v476_v55, %v504_v0 }
  0xdb   : > { %v438_v57 = vpop.f32.mrf.mxu2 }
  0xdc   : > { %v511_v60 = vsel %vm485_vm9, %v463_v54, %v499_v56  ;;  %v439_v61 = vadd.f32 %v1335_v52, %v438_v57  ;;  %v477_v63 = vpop.f32.mrf.mxu3 }
  0xdd   : > { %v977_v62 = vpack.c.bf16 %v511_v60, %v510_v59 }
  0xde   : > { %v478_v1 = vadd.f32 %v477_v63, %v439_v61 }
  0xdf   : > { %995 = vst [vmem:[%s1350_s12 + $0x10] sm:$0xff] %v977_v62  }
  0xe0   : > { %vm491_vm11 = vcmp.gt.f32.partialorder %v478_v1, 0.0  ;;  %v505_v2 = vmul.f32 %v1341_v58, %v478_v1 }
  0xe1   : > { %548 = sbr.rel (!%p1246_p4) target bundleno = 289 (0x121), region = 36 }
  0xe2   : > { %v517_v4 = vsel %vm491_vm11, %v478_v1, %v505_v2 }
  0xe3   : > { %v992_v5 = vpack.c.bf16 %v517_v4, %v516_v3 }
  0xe5   : > { %998 = vst [vmem:[%s1350_s12 + $0x28] sm:$0xff] %v992_v5  }
  0xe6   : > { %s1465_s24 = smov (!%p551_p8, %s550_s24), 12 }
  0xe7   : > { %s922_s29 = sshll.u32 %s1465_s24, 2 }
  0xe8   : > { %p925_p9 = scmp.eq.s32.totalorder %s922_s29, 0 }
  0xe9   : > { %1107 = sdivrem.u32 (!%p925_p9), %s1465_s24, 12 }
  0xea   : > { %559 = sbr.rel (%p925_p9) target bundleno = 289 (0x121), region = 40 }
  0xf2   : > { %s1388_s20 = spop.drf %1107 }
  0xf3   : > { %s1109_s30 = spop.drf %1107  ;;  %p926_p10 = scmp.le.s32.totalorder %s1388_s20, 0 }
  0xf4   : > { %s1457_s15 = smov (!%p926_p10), %s1382_s28  ;;  %s1458_s6 = smov (!%p926_p10), %s1350_s12 }
  0xf5   : > { %760 = sbr.rel (%p926_p10) target bundleno = 263 (0x107), region = 112  ;;  %s1397_s4 = smov (!%p926_p10), 0  }
  0xf6   : > { %s1399_s5 = smov (!%p926_p10), 0  }
  0xfa LB: >> { %v577_v52 = vld [vmem:[%s1175_s6] sm:$0xf]  ;;  %v579_v58 = vld [vmem:[%s1175_s6 + $0x4] sm:$0xf]  ;;  %v581_v6 = vld [vmem:[%s1175_s6 + $0x8] sm:$0xf]  ;;  %s1183_s5 = sphi %s1399_s5, %s571_s5   ;;  %s1179_s4 = sphi %s1397_s4, %s1460_s4   ;;  %s1175_s6 = sphi %s1458_s6, %s606_s6   ;;  %s1171_s15 = sphi %s1457_s15, %s1459_s15  }
  0xfb   : >> { %578 = vst [vmem:[%s1171_s15] sm:$0xf] %v577_v52  ;;  %v583_v7 = vld [vmem:[%s1175_s6 + $0xc] sm:$0xf]  ;;  %s601_s7 = sadd.s32 1, %s1179_s4  ;;  %v585_v8 = vld [vmem:[%s1175_s6 + $0x10] sm:$0xf] }
  0xfc   : >> { %580 = vst [vmem:[%s1171_s15 + $0x4] sm:$0xf] %v579_v58  ;;  %p602_p11 = scmp.ge.s32.totalorder %s601_s7, %s1388_s20  ;;  %v587_v9 = vld [vmem:[%s1175_s6 + $0x14] sm:$0xf]  ;;  %v589_v10 = vld [vmem:[%s1175_s6 + $0x18] sm:$0xf] }
  0xfd   : >> { %582 = vst [vmem:[%s1171_s15 + $0x8] sm:$0xf] %v581_v6  ;;  %v591_v11 = vld [vmem:[%s1175_s6 + $0x1c] sm:$0xf]  ;;  %v593_v12 = vld [vmem:[%s1175_s6 + $0x20] sm:$0xf] }
  0xfe   : >> { %584 = vst [vmem:[%s1171_s15 + $0xc] sm:$0xf] %v583_v7  ;;  %s1467_s7 = smov (%p602_p11, %s601_s7), 0  ;;  %v595_v13 = vld [vmem:[%s1175_s6 + $0x24] sm:$0xf]  ;;  %s571_s5 = sadd.s32 1, %s1183_s5  }
  0xff   : >> { %586 = vst [vmem:[%s1171_s15 + $0x10] sm:$0xf] %v585_v8  ;;  %s604_s8 = smul.u32 48, %s1467_s7  ;;  %v597_v14 = vld [vmem:[%s1175_s6 + $0x28] sm:$0xf]  ;;  %p570_p12 = scmp.ge.s32.totalorder %s571_s5, %s1388_s20 }
 0x100   : >> { %588 = vst [vmem:[%s1171_s15 + $0x14] sm:$0xf] %v587_v9  ;;  %v599_v15 = vld [vmem:[%s1175_s6 + $0x2c] sm:$0xf]  ;;  %s1460_s4 = smov %s1467_s7 }
 0x101   : >> { %590 = vst [vmem:[%s1171_s15 + $0x18] sm:$0xf] %v589_v10  ;;  %s606_s6 = scalar_lea.vmem %s1350_s12, %s604_s8 [#allocation2]   ;;  %s607_s9 = scalar_lea.vmem %s1382_s28, %s604_s8  }
 0x102   : >> { %592 = vst [vmem:[%s1171_s15 + $0x1c] sm:$0xf] %v591_v11  ;;  %573 = sbr.rel (!%p570_p12) target bundleno = 250 (0xfa), region = 118 }
 0x103   : >> { %594 = vst [vmem:[%s1171_s15 + $0x20] sm:$0xf] %v593_v12 }
 0x104   : >> { %596 = vst [vmem:[%s1171_s15 + $0x24] sm:$0xf] %v595_v13 }
 0x105   : >> { %598 = vst [vmem:[%s1171_s15 + $0x28] sm:$0xf] %v597_v14 }
 0x106   : >> { %600 = vst [vmem:[%s1171_s15 + $0x2c] sm:$0xf] %v599_v15  ;;  %s1459_s15 = smov %s607_s9 }
 0x107 PF: > { %1110 = sdivrem.u32 %s1465_s24, 12 }
 0x108   : > { %s927_s10 = smul.u32 48, %s1388_s20 }
 0x10a   : > { %s1437_s11 = scalar_lea.vmem %s1350_s12, %s927_s10 [#allocation2]   ;;  %s614_s14 = scalar_lea.vmem %s1382_s28, %s927_s10  }
 0x110   : > { %s1111_s17 = spop.drf %1110 }
 0x111   : > { %s1112_s18 = spop.drf %1110 }
 0x112   : > { %p929_p13 = scmp.le.s32.totalorder %s1112_s18, 0 }
 0x113   : > { %s1185_s21 = smov (!%p929_p13), %s614_s14   ;;  %s1189_s22 = smov (!%p929_p13), %s1437_s11  }
 0x114   : > { %774 = sbr.rel (%p929_p13) target bundleno = 289 (0x121), region = 123  ;;  %s1193_s23 = smov (!%p929_p13), 0  }
 0x115   : > { %s1197_s25 = smov (!%p929_p13), 0  }
 0x119 LB: >> { %v624_v16 = vld [vmem:[%s1191_s22] sm:$0xf]  ;;  %s626_s12 = sadd.s32 1, %s1195_s23  ;;  %s618_s25 = sadd.s32 1, %s1199_s25   ;;  %s1199_s25 = sphi %s1197_s25, %s618_s25   ;;  %s1195_s23 = sphi %s1193_s23, %s1194_s23   ;;  %s1191_s22 = sphi %s1189_s22, %s631_s22   ;;  %s1187_s21 = sphi %s1185_s21, %s632_s21  }
 0x11a   : >> { %625 = vst [vmem:[%s1187_s21] sm:$0xf] %v624_v16  ;;  %p627_p0 = scmp.ge.s32.totalorder %s626_s12, %s1112_s18  ;;  %p617_p1 = scmp.ge.s32.totalorder %s618_s25, %s1112_s18 }
 0x11c   : >> { %s1469_s12 = smov (%p627_p0, %s626_s12), 0  ;;  %620 = sbr.rel (!%p617_p1) target bundleno = 281 (0x119), region = 129 }
 0x11d   : >> { %s930_s24 = sshll.u32 %s1469_s12, 2  ;;  %s1194_s23 = smov %s1469_s12  }
 0x11e   : >> { %s631_s22 = scalar_lea.vmem %s1437_s11, %s930_s24 [#allocation2]   ;;  %s632_s21 = scalar_lea.vmem %s614_s14, %s930_s24  }
 0x121 PF: > { %p10_p2 = scmp.ge.s32.totalorder %s1236_s16, 4   ;;  %s1461_s12 = smov %s1163_s13 }
 0x122   : > { %s1462_s13 = smov %s1244_s19  ;;  %s1463_s14 = smov %s1236_s16 }
 0x123   :  { %12 = sbr.rel (!%p10_p2) target bundleno = 2 (0x2), region = 140 }

// kernel: rnet_forward.9
= control target key start
LH: loop header
LB: loop body
LE: loop exit
PB: predicated region body
PF: predicated region fallthrough
CT: control target
= control target key end

     0   :  { %s522_s6 = smov 0   ;;  %s524_s7 = smov 0   ;;  %s585_s0 = inlined_call_operand.vmem [shape: bf16[9,32,128], index: 0, kind: input, shape index: {}]   ;;  %s586_s1 = inlined_call_operand.vmem [shape: bf16[32,128], index: 1, kind: output, shape index: {}]  }
   0x1   :  { %s526_s8 = smov 0  }
   0x2 LB: > { %s385_s9 = sadd.s32 4294967295, %s510_s8   ;;  %s539_s10 = sadd.s32 1, %s510_s8   ;;  %s510_s8 = sphi %s526_s8, %s589_s8   ;;  %s506_s7 = sphi %s524_s7, %s588_s7   ;;  %s502_s6 = sphi %s522_s6, %s587_s6  }
   0x3   : > { %s15_s11 = ssub.s32 %s510_s8, %s539_s10  ;;  %s18_s12 = sadd.s32 1, %s506_s7 }
   0x4   : > { %p16_p0 = scmp.eq.s32.totalorder %s15_s11, 0  ;;  %p25_p1 = scmp.ne.s32.totalorder %s506_s7, %s502_s6 }
   0x5   : > { %p26_p2 = scmp.eq.s32.totalorder %s510_s8, 0  ;;  %p388_p4 = scmp.ge.s32.totalorder %s510_s8, 2 }
   0x6   : > { %s548_s13 = scalar_select %p16_p0, %s506_s7, %s18_s12  }
   0x7   : > { %p27_p3 = por %p26_p2, %p25_p1  ;;  %77 = sbr.rel (%p388_p4) target bundleno = 25 (0x19), region = 16 }
   0xc   : > { %80 = sbr.rel (!%p27_p3) target bundleno = 25 (0x19), region = 20  ;;  %s82_s14 = sand.u32 (%p27_p3), 1, %s506_s7  }
   0xd   : > { %s412_s15 = sshll.u32 (%p27_p3), %s510_s8, 3  ;;  %s462_s16 = smul.u32 (%p27_p3), 72, %s82_s14 }
   0xe   : > { %s87_s19 = scalar_lea.vmem (%p27_p3), %s585_s0, %s412_s15 }
   0xf   : > { %v104_v0 = vld [vmem:[%s87_s19] sm:$0xff] (%p27_p3)   ;;  %v108_v1 = vld [vmem:[%s87_s19 + $0x10] sm:$0xff] (%p27_p3)   ;;  %s84_s20 = scalar_lea.vmem (%p27_p3), [#allocation2], %s462_s16 }
  0x10   : > { %v112_v2 = vld [vmem:[%s87_s19 + $0x20] sm:$0xff] (%p27_p3)   ;;  %105 = vst [vmem:[%s84_s20] sm:$0xff] (%p27_p3), %v104_v0   ;;  %v116_v3 = vld [vmem:[%s87_s19 + $0x30] sm:$0xff] (%p27_p3)  }
  0x11   : > { %109 = vst [vmem:[%s84_s20 + $0x8] sm:$0xff] %v108_v1   ;;  %v120_v4 = vld [vmem:[%s87_s19 + $0x40] sm:$0xff]   ;;  %v124_v5 = vld [vmem:[%s87_s19 + $0x50] sm:$0xff]  }
  0x12   : > { %113 = vst [vmem:[%s84_s20 + $0x10] sm:$0xff] %v112_v2   ;;  %v128_v6 = vld [vmem:[%s87_s19 + $0x60] sm:$0xff]   ;;  %v132_v7 = vld [vmem:[%s87_s19 + $0x70] sm:$0xff]  }
  0x13   : > { %117 = vst [vmem:[%s84_s20 + $0x18] sm:$0xff] %v116_v3   ;;  %v136_v8 = vld [vmem:[%s87_s19 + $0x80] sm:$0xff]  }
  0x14   : > { %121 = vst [vmem:[%s84_s20 + $0x20] sm:$0xff] %v120_v4  }
  0x15   : > { %125 = vst [vmem:[%s84_s20 + $0x28] sm:$0xff] %v124_v5  }
  0x16   : > { %129 = vst [vmem:[%s84_s20 + $0x30] sm:$0xff] %v128_v6  }
  0x17   : > { %133 = vst [vmem:[%s84_s20 + $0x38] sm:$0xff] %v132_v7  }
  0x18   : > { %137 = vst [vmem:[%s84_s20 + $0x40] sm:$0xff] %v136_v8  }
  0x19 PF: > { %p391_p5 = scmp.ge.s32.totalorder %s510_s8, 1  ;;  %p198_p6 = scmp.lt.s32.totalorder %s510_s8, 3 }
  0x1b   : > { %p199_p7 = pnand %p391_p5, %p198_p6 }
  0x1c   : > { %s205_s21 = sand.u32 (!%p199_p7), 1, %s502_s6   ;;  %s392_s24 = sshll.u32 (!%p199_p7), %s385_s9, 1 }
  0x1d   : > { %202 = sbr.rel (%p199_p7) target bundleno = 56 (0x38), region = 61  ;;  %p226_p8 = scmp.lt.s32.totalorder (!%p199_p7), %s392_s24, 3 }
  0x1e   : > { %s463_s22 = smul.u32 (!%p199_p7), 72, %s205_s21 }
  0x20   : > { %s559_s23 = scalar_lea.vmem (!%p199_p7), [#allocation2], %s463_s22 }
  0x22   : > { %v414_v9 = vld [vmem:[%s559_s23] sm:$0xff]   ;;  %v454_v10 = vld [vmem:[%s559_s23 + $0x8] sm:$0xff]   ;;  %v455_v11 = vld [vmem:[%s559_s23 + $0x10] sm:$0xff]   ;;  %s591_s24 = smov (!%p226_p8, %s392_s24), 3 }
  0x23   : > { %v415_v12 = vunpack.c.l.bf16 %v414_v9  ;;  %v416_v13 = vunpack.c.h.bf16 %v414_v9  ;;  %v419_v14 = vunpack.c.l.bf16 %v454_v10  ;;  %v420_v15 = vunpack.c.h.bf16 %v454_v10  ;;  %v456_v16 = vld [vmem:[%s559_s23 + $0x18] sm:$0xff]   ;;  %v457_v19 = vld [vmem:[%s559_s23 + $0x20] sm:$0xff]   ;;  %v458_v24 = vld [vmem:[%s559_s23 + $0x28] sm:$0xff]   ;;  %s393_s25 = sshll.u32 %s591_s24, 2 }
  0x24   : > { %v423_v17 = vunpack.c.l.bf16 %v455_v11  ;;  %v424_v18 = vunpack.c.h.bf16 %v455_v11  ;;  %v427_v22 = vunpack.c.l.bf16 %v456_v16  ;;  %v428_v23 = vunpack.c.h.bf16 %v456_v16  ;;  %v459_v29 = vld [vmem:[%s559_s23 + $0x30] sm:$0xff]   ;;  %v460_v34 = vld [vmem:[%s559_s23 + $0x38] sm:$0xff]   ;;  %v461_v39 = vld [vmem:[%s559_s23 + $0x40] sm:$0xff]   ;;  %s229_s28 = scalar_lea.vmem %s586_s1, %s393_s25 }
  0x25   : > { %v240_v20 = vmax.f32 %v415_v12, %v419_v14  ;;  %v241_v21 = vmax.f32 %v416_v13, %v420_v15  ;;  %v431_v27 = vunpack.c.l.bf16 %v457_v19  ;;  %v432_v28 = vunpack.c.h.bf16 %v457_v19 }
  0x26   : > { %v435_v32 = vunpack.c.l.bf16 %v458_v24  ;;  %v436_v33 = vunpack.c.h.bf16 %v458_v24  ;;  %v439_v37 = vunpack.c.l.bf16 %v459_v29  ;;  %v440_v38 = vunpack.c.h.bf16 %v459_v29 }
  0x27   : > { %v251_v25 = vmax.f32 %v240_v20, %v423_v17  ;;  %v252_v26 = vmax.f32 %v241_v21, %v424_v18  ;;  %v443_v42 = vunpack.c.l.bf16 %v460_v34  ;;  %v444_v43 = vunpack.c.h.bf16 %v460_v34 }
  0x28   : > { %v447_v46 = vunpack.c.l.bf16 %v461_v39  ;;  %v448_v47 = vunpack.c.h.bf16 %v461_v39 }
  0x29   : > { %v262_v30 = vmax.f32 %v251_v25, %v427_v22  ;;  %v263_v31 = vmax.f32 %v252_v26, %v428_v23 }
  0x2b   : > { %v273_v35 = vmax.f32 %v262_v30, %v431_v27  ;;  %v274_v36 = vmax.f32 %v263_v31, %v432_v28 }
  0x2d   : > { %v284_v40 = vmax.f32 %v273_v35, %v435_v32  ;;  %v285_v41 = vmax.f32 %v274_v36, %v436_v33 }
  0x2f   : > { %v295_v44 = vmax.f32 %v284_v40, %v439_v37  ;;  %v296_v45 = vmax.f32 %v285_v41, %v440_v38 }
  0x31   : > { %v306_v48 = vmax.f32 %v295_v44, %v443_v42  ;;  %v307_v49 = vmax.f32 %v296_v45, %v444_v43 }
  0x33   : > { %v317_v50 = vmax.f32 %v306_v48, %v447_v46  ;;  %v318_v51 = vmax.f32 %v307_v49, %v448_v47 }
  0x35   : > { %v452_v52 = vpack.c.bf16 %v318_v51, %v317_v50 }
  0x37   : > { %453 = vst [vmem:[%s229_s28] sm:$0xff] %v452_v52  }
  0x38 PF: > { %p8_p9 = scmp.ge.s32.totalorder %s539_s10, 4   ;;  %s587_s6 = smov %s506_s7 }
  0x39   : > { %s588_s7 = smov %s548_s13  ;;  %s589_s8 = smov %s539_s10 }
  0x3a   :  { %10 = sbr.rel (!%p8_p9) target bundleno = 2 (0x2), region = 108 }

// kernel: rnet_forward.10
= control target key start
LH: loop header
LB: loop body
LE: loop exit
PB: predicated region body
PF: predicated region fallthrough
CT: control target
= control target key end

     0   :  { %s877_s12 = smov 0   ;;  %s879_s13 = smov 0   ;;  %s1001_s0 = inlined_call_operand.vmem [shape: bf16[18,192], index: 0, kind: input, shape index: {}]   ;;  %s1002_s1 = inlined_call_operand.vmem [shape: bf16[192,128], index: 1, kind: input, shape index: {}]   ;;  %s1003_s2 = inlined_call_operand.vmem [shape: f32[2,128], index: 2, kind: input, shape index: {}]   ;;  %s1004_s3 = inlined_call_operand.vmem [shape: bf16[18,128], index: 3, kind: output, shape index: {}]  }
   0x1   :  { %s881_s14 = smov 0  }
   0x2 LB: > { %s890_s15 = sadd.s32 4294967295, %s823_s14   ;;  %s892_s16 = sadd.s32 1, %s823_s14   ;;  %s823_s14 = sphi %s881_s14, %s1008_s14   ;;  %s819_s13 = sphi %s879_s13, %s1007_s13   ;;  %s815_s12 = sphi %s877_s12, %s1006_s12  }
   0x3   : > { %s85_s17 = ssub.s32 %s823_s14, %s892_s16  ;;  %s88_s18 = sadd.s32 1, %s819_s13 }
   0x4   : > { %p86_p0 = scmp.eq.s32.totalorder %s85_s17, 0  ;;  %p98_p1 = scmp.ne.s32.totalorder %s819_s13, %s815_s12 }
   0x5   : > { %p99_p2 = scmp.eq.s32.totalorder %s890_s15, 1  ;;  %p577_p3 = scmp.ge.s32.totalorder %s823_s14, 1 }
   0x6   : > { %s900_s19 = scalar_select %p86_p0, %s819_s13, %s88_s18  }
   0x7   : > { %p902_p4 = por %p99_p2, %p98_p1  ;;  %p149_p5 = scmp.lt.s32.totalorder %s823_s14, 3 }
   0x9   : > { %p150_p6 = pnand %p577_p3, %p149_p5 }
   0xa   : > { %s910_s23 = sshll.u32 (!%p150_p6), %s890_s15, 1  ;;  %s175_s8 = sand.u32 (!%p150_p6), 1, %s815_s12  }
   0xb   : > { %153 = sbr.rel (%p150_p6) target bundleno = 231 (0xe7), region = 32  ;;  %p184_p7 = scmp.lt.s32.totalorder (!%p150_p6), %s910_s23, 2 }
   0xc   : > { %s578_s9 = sshll.u32 (!%p150_p6), %s175_s8, 3 }
   0xd   : > { %s957_s10 = scalar_lea.vmem (!%p150_p6), [#allocation2], %s578_s9  }
  0x10   : > { %v666_v0 = vld [vmem:[%s1002_s1 + $0x38] sm:$0xff]  ;;  %v665_v2 = vld [vmem:[%s1002_s1 + $0x30] sm:$0xff]  ;;  %s185_s30 = scalar_select %p184_p7, %s910_s23, 2  ;;  %v664_v4 = vld [vmem:[%s1002_s1 + $0x28] sm:$0xff]  ;;  %vm310_vm0 = vcmask 523264  }
  0x11   : > { %v670_v1 = vld [vmem:[%s1002_s1 + $0x58] sm:$0xff]  ;;  %314 = vmatpush.bf16.msra.mxu0 %v666_v0  ;;  %v669_v3 = vld [vmem:[%s1002_s1 + $0x50] sm:$0xff]  ;;  %v668_v5 = vld [vmem:[%s1002_s1 + $0x48] sm:$0xff]  ;;  %s362_s12 = ssub.s32 (%p902_p4), 3, %s910_s23 }
  0x12   : > { %332 = vmatpush.bf16.msra.mxu1 %v670_v1  ;;  %s656_s4 = sshll.u32 %s185_s30, 3  ;;  %v663_v6 = vld [vmem:[%s1002_s1 + $0x20] sm:$0xff]  ;;  %v662_v10 = vld [vmem:[%s1002_s1 + $0x18] sm:$0xff]  ;;  %v661_v12 = vld [vmem:[%s1002_s1 + $0x10] sm:$0xff]  ;;  %p363_p8 = scmp.lt.s32.totalorder (%p902_p4), %s362_s12, 2 }
  0x13   : > { %s188_s11 = scalar_lea.vmem %s1001_s0, %s656_s4  ;;  %v667_v7 = vld [vmem:[%s1002_s1 + $0x40] sm:$0xff]  ;;  %v660_v13 = vld [vmem:[%s1002_s1 + $0x8] sm:$0xff] }
  0x14   : > { %v657_v8 = vld [vmem:[%s188_s11 + $0x4] sm:$0xf]  ;;  %v586_v9 = vld [vmem:[%s188_s11 + $0x8] sm:$0xf0]  ;;  %v584_v15 = vld [vmem:[%s188_s11] sm:$0xf] }
  0x15   : > { %315 = vmatpush.bf16.msra.mxu0 %v665_v2  ;;  %v589_v11 = vor.u32 %v657_v8, %v586_v9  ;;  %v659_v14 = vld [vmem:[%s1002_s1] sm:$0xff]  ;;  %v658_v16 = vld [vmem:[%s188_s11 + $0x4] sm:$0xf0]  ;;  %s671_s11 = sshll.u32 (%p902_p4), %s890_s15, 3 }
  0x16   : > { %333 = vmatpush.bf16.msra.mxu1 %v669_v3  ;;  %v585_v17 = vor.u32 %v658_v16, %v584_v15  ;;  %v767_v18 = vld [vmem:[%s1003_s2] ss:$0 sm:$0xff]  ;;  %v768_v23 = vld [vmem:[%s1003_s2 + $0x1] ss:$0 sm:$0xff]  ;;  %s967_s18 = scalar_lea.vmem (%p902_p4), %s1004_s3, %s671_s11  }
  0x19   : > { %316 = vmatpush.bf16.msra.mxu0 %v664_v4 }
  0x1a   : > { %334 = vmatpush.bf16.msra.mxu1 %v668_v5 }
  0x1d   : > { %317 = vmatpush.bf16.msra.mxu0 %v663_v6 }
  0x1e   : > { %335 = vmatpush.bf16.msra.mxu1 %v667_v7 }
  0x21   : > { %318 = vmatpush.bf16.msra.mxu0 %v662_v10  ;;  %638 = vmatmul.msk.bf16.vlgmr.msra.gmra.mxu1 %vm310_vm0, %v589_v11 }
  0x25   : > { %319 = vmatpush.bf16.msra.mxu0 %v661_v12 }
  0x29   : > { %320 = vmatpush.bf16.msra.mxu0 %v660_v13 }
  0x2d   : > { %321 = vmatpush.bf16.msra.mxu0 %v659_v14 }
  0x30   : > { %322 = vmatmul.bf16.vlgmr.msra.gmra.mxu0 %v585_v17 }
  0x9e   : > { %v337_v19 = vpop.f32.mrf.mxu1 }
  0xa6   : > { %v339_v26 = vpop.f32.mrf.mxu1 }
  0xad   : > { %v323_v20 = vpop.f32.mrf.mxu0 }
  0xae   : > { %v324_v21 = vadd.f32 %v767_v18, %v323_v20 }
  0xb0   : > { %v338_v22 = vadd.f32 %v337_v19, %v324_v21 }
  0xb2   : > { %v346_v27 = vmul.f32 %v768_v23, %v338_v22  ;;  %vm342_vm1 = vcmp.gt.f32.partialorder %v338_v22, 0.0 }
  0xb4   : > { %v348_v30 = vsel %vm342_vm1, %v338_v22, %v346_v27 }
  0xb5   : > { %v325_v24 = vpop.f32.mrf.mxu0 }
  0xb6   : > { %v326_v25 = vadd.f32 %v767_v18, %v325_v24 }
  0xb8   : > { %v340_v28 = vadd.f32 %v339_v26, %v326_v25 }
  0xba   : > { %vm343_vm2 = vcmp.gt.f32.partialorder %v340_v28, 0.0  ;;  %v347_v29 = vmul.f32 %v768_v23, %v340_v28 }
  0xbb   : > { %360 = sbr.rel (!%p902_p4) target bundleno = 231 (0xe7), region = 36 }
  0xbc   : > { %v349_v31 = vsel %vm343_vm2, %v340_v28, %v347_v29 }
  0xbd   : > { %v677_v32 = vpack.c.bf16 %v349_v31, %v348_v30 }
  0xbf   : > { %678 = vst [vmem:[%s957_s10] sm:$0xff] %v677_v32  }
  0xc0   : > { %s1010_s12 = smov (!%p363_p8, %s362_s12), 2 }
  0xc1   : > { %s641_s21 = sshll.u32 %s1010_s12, 2 }
  0xc2   : > { %p644_p9 = scmp.eq.s32.totalorder %s641_s21, 0 }
  0xc3   : > { %s973_s22 = sshrl.u32 (!%p644_p9), %s1010_s12, 1 }
  0xc4   : > { %371 = sbr.rel (%p644_p9) target bundleno = 231 (0xe7), region = 40  ;;  %p645_p10 = scmp.le.s32.totalorder (!%p644_p9), %s973_s22, 0 }
  0xc9   : > { %530 = sbr.rel (%p645_p10) target bundleno = 214 (0xd6), region = 112  ;;  %s825_s15 = smov (!%p645_p10), %s967_s18  }
  0xca   : > { %s829_s20 = smov (!%p645_p10), %s957_s10   ;;  %s833_s23 = smov (!%p645_p10), 0  }
  0xcb   : > { %s837_s24 = smov (!%p645_p10), 0  }
  0xce LB: >> { %v388_v33 = vld [vmem:[%s831_s20] sm:$0xf]  ;;  %v390_v34 = vld [vmem:[%s831_s20 + $0x4] sm:$0xf]  ;;  %s392_s25 = sadd.s32 1, %s835_s23  ;;  %s382_s24 = sadd.s32 1, %s839_s24   ;;  %s839_s24 = sphi %s837_s24, %s382_s24   ;;  %s835_s23 = sphi %s833_s23, %s834_s23   ;;  %s831_s20 = sphi %s829_s20, %s397_s20   ;;  %s827_s15 = sphi %s825_s15, %s398_s15  }
  0xcf   : >> { %389 = vst [vmem:[%s827_s15] sm:$0xf] %v388_v33  ;;  %p393_p11 = scmp.ge.s32.totalorder %s392_s25, %s973_s22  ;;  %p381_p12 = scmp.ge.s32.totalorder %s382_s24, %s973_s22 }
  0xd0   : >> { %391 = vst [vmem:[%s827_s15 + $0x4] sm:$0xf] %v390_v34 }
  0xd1   : >> { %s1012_s25 = smov (%p393_p11, %s392_s25), 0  ;;  %384 = sbr.rel (!%p381_p12) target bundleno = 206 (0xce), region = 118 }
  0xd2   : >> { %s646_s26 = sshll.u32 %s1012_s25, 3  ;;  %s834_s23 = smov %s1012_s25  }
  0xd3   : >> { %s397_s20 = scalar_lea.vmem %s957_s10, %s646_s26 [#allocation2]   ;;  %s398_s15 = scalar_lea.vmem %s967_s18, %s646_s26  }
  0xd6 PF: > { %s983_s27 = sand.u32 1, %s1010_s12   ;;  %s672_s28 = sshll.u32 %s973_s22, 3 }
  0xd7   : > { %s403_s29 = scalar_lea.vmem %s957_s10, %s672_s28 [#allocation2]   ;;  %s405_s30 = scalar_lea.vmem %s967_s18, %s672_s28  }
  0xd8   : > { %p651_p13 = scmp.le.s32.totalorder %s983_s27, 0 }
  0xd9   : > { %s841_s4 = smov (!%p651_p13), %s405_s30   ;;  %s845_s5 = smov (!%p651_p13), %s403_s29  }
  0xda   : > { %544 = sbr.rel (%p651_p13) target bundleno = 231 (0xe7), region = 123  ;;  %s849_s6 = smov (!%p651_p13), 0  }
  0xdb   : > { %s853_s7 = smov (!%p651_p13), 0  }
  0xdf LB: >> { %v415_v35 = vld [vmem:[%s847_s5] sm:$0xf]  ;;  %s417_s8 = sadd.s32 1, %s851_s6  ;;  %s409_s7 = sadd.s32 1, %s855_s7   ;;  %s855_s7 = sphi %s853_s7, %s409_s7   ;;  %s851_s6 = sphi %s849_s6, %s850_s6   ;;  %s847_s5 = sphi %s845_s5, %s422_s5   ;;  %s843_s4 = sphi %s841_s4, %s423_s4  }
  0xe0   : >> { %416 = vst [vmem:[%s843_s4] sm:$0xf] %v415_v35  ;;  %p418_p0 = scmp.ge.s32.totalorder %s417_s8, %s983_s27  ;;  %p408_p1 = scmp.ge.s32.totalorder %s409_s7, %s983_s27 }
  0xe2   : >> { %s1014_s8 = smov (%p418_p0, %s417_s8), 0  ;;  %411 = sbr.rel (!%p408_p1) target bundleno = 223 (0xdf), region = 129 }
  0xe3   : >> { %s652_s9 = sshll.u32 %s1014_s8, 2  ;;  %s850_s6 = smov %s1014_s8  }
  0xe4   : >> { %s422_s5 = scalar_lea.vmem %s403_s29, %s652_s9 [#allocation2]   ;;  %s423_s4 = scalar_lea.vmem %s405_s30, %s652_s9  }
  0xe7 PF: > { %p10_p2 = scmp.ge.s32.totalorder %s892_s16, 4   ;;  %s1006_s12 = smov %s819_s13 }
  0xe8   : > { %s1007_s13 = smov %s900_s19  ;;  %s1008_s14 = smov %s892_s16 }
  0xe9   :  { %12 = sbr.rel (!%p10_p2) target bundleno = 2 (0x2), region = 140 }

// kernel: rnet_forward.11
= control target key start
LH: loop header
LB: loop body
LE: loop exit
PB: predicated region body
PF: predicated region fallthrough
CT: control target
= control target key end

     0   :  { %vm323_vm0 = vcmask 523264   ;;  %s912_s1 = inlined_call_operand.vmem [shape: bf16[576,128], index: 1, kind: input, shape index: {}]   ;;  %s913_s0 = inlined_call_operand.vmem [shape: bf16[2,576], index: 0, kind: input, shape index: {}]   ;;  %s914_s2 = inlined_call_operand.vmem [shape: f32[2,128], index: 2, kind: input, shape index: {}]   ;;  %s915_s3 = inlined_call_operand.vmem [shape: bf16[128,128], index: 3, kind: input, shape index: {}]   ;;  %s916_s4 = inlined_call_operand.vmem [shape: f32[1,128], index: 4, kind: input, shape index: {}]   ;;  %s917_s5 = inlined_call_operand.vmem [shape: f32[2,128], index: 5, kind: output, shape index: {}]  }
   0x1   :  { %v691_v0 = vld [vmem:[%s912_s1 + $0x38] sm:$0xff]  ;;  %v690_v4 = vld [vmem:[%s912_s1 + $0x30] sm:$0xff]  ;;  %v689_v8 = vld [vmem:[%s912_s1 + $0x28] sm:$0xff] }
   0x2   :  { %v707_v1 = vld [vmem:[%s912_s1 + $0xb8] sm:$0xff]  ;;  %326 = vmatpush.bf16.msra.mxu0 %v691_v0  ;;  %v706_v5 = vld [vmem:[%s912_s1 + $0xb0] sm:$0xff]  ;;  %v705_v9 = vld [vmem:[%s912_s1 + $0xa8] sm:$0xff] }
   0x3   :  { %v715_v2 = vld [vmem:[%s912_s1 + $0xf8] sm:$0xff]  ;;  %352 = vmatpush.bf16.msra.mxu2 %v707_v1  ;;  %v714_v6 = vld [vmem:[%s912_s1 + $0xf0] sm:$0xff]  ;;  %v713_v10 = vld [vmem:[%s912_s1 + $0xe8] sm:$0xff] }
   0x4   :  { %v699_v3 = vld [vmem:[%s912_s1 + $0x78] sm:$0xff]  ;;  %365 = vmatpush.bf16.msra.mxu3 %v715_v2  ;;  %v698_v7 = vld [vmem:[%s912_s1 + $0x70] sm:$0xff]  ;;  %v697_v11 = vld [vmem:[%s912_s1 + $0x68] sm:$0xff] }
   0x5   :  { %339 = vmatpush.bf16.msra.mxu1 %v699_v3  ;;  %v688_v12 = vld [vmem:[%s912_s1 + $0x20] sm:$0xff]  ;;  %v687_v17 = vld [vmem:[%s912_s1 + $0x18] sm:$0xff]  ;;  %v686_v21 = vld [vmem:[%s912_s1 + $0x10] sm:$0xff] }
   0x6   :  { %327 = vmatpush.bf16.msra.mxu0 %v690_v4  ;;  %v704_v13 = vld [vmem:[%s912_s1 + $0xa0] sm:$0xff]  ;;  %v703_v18 = vld [vmem:[%s912_s1 + $0x98] sm:$0xff]  ;;  %v702_v22 = vld [vmem:[%s912_s1 + $0x90] sm:$0xff] }
   0x7   :  { %353 = vmatpush.bf16.msra.mxu2 %v706_v5  ;;  %v21_v14 = vld [vmem:[%s913_s0] sm:$0x1f]  ;;  %v711_v19 = vld [vmem:[%s912_s1 + $0xd8] sm:$0xff]  ;;  %v710_v23 = vld [vmem:[%s912_s1 + $0xd0] sm:$0xff] }
   0x8   :  { %366 = vmatpush.bf16.msra.mxu3 %v714_v6  ;;  %v712_v15 = vld [vmem:[%s912_s1 + $0xe0] sm:$0xff]  ;;  %97 = vst [vmem:[#allocation1] ss:$9 sm:$0xff] %v21_v14  ;;  %v695_v20 = vld [vmem:[%s912_s1 + $0x58] sm:$0xff]  ;;  %v694_v24 = vld [vmem:[%s912_s1 + $0x50] sm:$0xff]  ;;  %v478_v14 = vlaneseq }
   0x9   :  { %340 = vmatpush.bf16.msra.mxu1 %v698_v7  ;;  %v696_v16 = vld [vmem:[%s912_s1 + $0x60] sm:$0xff]  ;;  %v685_v25 = vld [vmem:[%s912_s1 + $0x8] sm:$0xff]  ;;  %v719_v33 = vld [vmem:[%s912_s1 + $0x118] sm:$0xff] }
   0xa   :  { %328 = vmatpush.bf16.msra.mxu0 %v689_v8  ;;  %v701_v26 = vld [vmem:[%s912_s1 + $0x88] sm:$0xff]  ;;  %v684_v29 = vld [vmem:[%s912_s1] sm:$0xff]  ;;  %v727_v34 = vld [vmem:[%s915_s3 + $0x38] sm:$0xff] }
   0xb   :  { %354 = vmatpush.bf16.msra.mxu2 %v705_v9  ;;  %v709_v27 = vld [vmem:[%s912_s1 + $0xc8] sm:$0xff]  ;;  %v700_v30 = vld [vmem:[%s912_s1 + $0x80] sm:$0xff]  ;;  %v718_v39 = vld [vmem:[%s912_s1 + $0x110] sm:$0xff] }
   0xc   :  { %367 = vmatpush.bf16.msra.mxu3 %v713_v10  ;;  %v693_v28 = vld [vmem:[%s912_s1 + $0x48] sm:$0xff]  ;;  %v708_v31 = vld [vmem:[%s912_s1 + $0xc0] sm:$0xff]  ;;  %v726_v40 = vld [vmem:[%s915_s3 + $0x30] sm:$0xff] }
   0xd   :  { %341 = vmatpush.bf16.msra.mxu1 %v697_v11  ;;  %v692_v32 = vld [vmem:[%s912_s1 + $0x40] sm:$0xff]  ;;  %v717_v41 = vld [vmem:[%s912_s1 + $0x108] sm:$0xff]  ;;  %v723_v46 = vld [vmem:[%s915_s3 + $0x18] sm:$0xff] }
   0xe   :  { %329 = vmatpush.bf16.msra.mxu0 %v688_v12  ;;  %v716_v42 = vld [vmem:[%s912_s1 + $0x100] sm:$0xff]  ;;  %v725_v44 = vld [vmem:[%s915_s3 + $0x28] sm:$0xff]  ;;  %v722_v47 = vld [vmem:[%s915_s3 + $0x10] sm:$0xff] }
   0xf   :  { %355 = vmatpush.bf16.msra.mxu2 %v704_v13  ;;  %v98_v35 = vld [vmem:[#allocation1] sm:$0xff]  ;;  %v100_v36 = vld [vmem:[#allocation1 + $0x12] sm:$0xff]  ;;  %v99_v38 = vld [vmem:[#allocation1 + $0x9] sm:$0xff] }
  0x10   :  { %368 = vmatpush.bf16.msra.mxu3 %v712_v15  ;;  %v101_v37 = vld [vmem:[#allocation1 + $0x1b] sm:$0xff]  ;;  %v102_v43 = vld [vmem:[#allocation1 + $0x24] sm:$0xff] }
  0x11   :  { %342 = vmatpush.bf16.msra.mxu1 %v696_v16  ;;  %v724_v45 = vld [vmem:[%s915_s3 + $0x20] sm:$0xff]  ;;  %v721_v48 = vld [vmem:[%s915_s3 + $0x8] sm:$0xff] }
  0x12   :  { %330 = vmatpush.bf16.msra.mxu0 %v687_v17  ;;  %v720_v49 = vld [vmem:[%s915_s3] sm:$0xff]  ;;  %v479_v17 = vand.u32 127, %v478_v14 }
  0x13   :  { %356 = vmatpush.bf16.msra.mxu2 %v703_v18  ;;  %v728_v51 = vld [vmem:[%s914_s2] ss:$0 sm:$0xff]  ;;  %v729_v61 = vld [vmem:[%s914_s2 + $0x1] ss:$0 sm:$0xff] }
  0x14   :  { %369 = vmatpush.bf16.msra.mxu3 %v711_v19  ;;  %v730_v6 = vld [vmem:[%s916_s4] ss:$0 sm:$0xff]  ;;  %vm480_vm4 = vcmp.eq.s32.totalorder %v479_v17, 0 }
  0x15   :  { %343 = vmatpush.bf16.msra.mxu1 %v695_v20 }
  0x16   :  { %331 = vmatpush.bf16.msra.mxu0 %v686_v21 }
  0x17   :  { %357 = vmatpush.bf16.msra.mxu2 %v702_v22 }
  0x18   :  { %370 = vmatpush.bf16.msra.mxu3 %v710_v23 }
  0x19   :  { %344 = vmatpush.bf16.msra.mxu1 %v694_v24 }
  0x1a   :  { %332 = vmatpush.bf16.msra.mxu0 %v685_v25 }
  0x1b   :  { %358 = vmatpush.bf16.msra.mxu2 %v701_v26 }
  0x1c   :  { %371 = vmatpush.bf16.msra.mxu3 %v709_v27 }
  0x1d   :  { %345 = vmatpush.bf16.msra.mxu1 %v693_v28 }
  0x1e   :  { %333 = vmatpush.bf16.msra.mxu0 %v684_v29 }
  0x1f   :  { %359 = vmatpush.bf16.msra.mxu2 %v700_v30 }
  0x20   :  { %372 = vmatpush.bf16.msra.mxu3 %v708_v31 }
  0x21   :  { %346 = vmatpush.bf16.msra.mxu1 %v692_v32  ;;  %334 = vmatmul.bf16.vlgmr.msra.gmra.mxu0 %v98_v35 }
  0x22   :  { %382 = vmatpush.bf16.msrb.mxu0 %v719_v33  ;;  %360 = vmatmul.bf16.vlgmr.msra.gmra.mxu2 %v100_v36 }
  0x23   :  { %373 = vmatmul.bf16.vlgmr.msra.gmra.mxu3 %v101_v37 }
  0x24   :  { %347 = vmatmul.bf16.vlgmr.msra.gmra.mxu1 %v99_v38 }
  0x25   :  { %465 = vmatpush.bf16.msrb.mxu1 %v727_v34 }
  0x26   :  { %383 = vmatpush.bf16.msrb.mxu0 %v718_v39 }
  0x29   :  { %466 = vmatpush.bf16.msrb.mxu1 %v726_v40 }
  0x2a   :  { %384 = vmatpush.bf16.msrb.mxu0 %v717_v41 }
  0x2d   :  { %467 = vmatpush.bf16.msrb.mxu1 %v725_v44 }
  0x2e   :  { %385 = vmatpush.bf16.msrb.mxu0 %v716_v42 }
  0x31   :  { %650 = vmatmul.msk.bf16.vlgmr.msrb.gmra.mxu0 %vm323_vm0, %v102_v43  ;;  %468 = vmatpush.bf16.msrb.mxu1 %v724_v45 }
  0x35   :  { %469 = vmatpush.bf16.msrb.mxu1 %v723_v46 }
  0x39   :  { %470 = vmatpush.bf16.msrb.mxu1 %v722_v47 }
  0x3d   :  { %471 = vmatpush.bf16.msrb.mxu1 %v721_v48 }
  0x41   :  { %472 = vmatpush.bf16.msrb.mxu1 %v720_v49 }
  0x9e   :  { %v335_v50 = vpop.f32.mrf.mxu0 }
  0x9f   :  { %v336_v53 = vadd.f32 %v728_v51, %v335_v50 }
  0xa1   :  { %v348_v52 = vpop.f32.mrf.mxu1 }
  0xa2   :  { %v349_v57 = vadd.f32 %v348_v52, %v336_v53 }
  0xa5   :  { %v361_v54 = vpop.f32.mrf.mxu2 }
  0xa6   :  { %v374_v55 = vpop.f32.mrf.mxu3  ;;  %v337_v56 = vpop.f32.mrf.mxu0  ;;  %v362_v59 = vadd.f32 %v361_v54, %v349_v57 }
  0xa8   :  { %v375_v62 = vadd.f32 %v374_v55, %v362_v59 }
  0xa9   :  { %v350_v58 = vpop.f32.mrf.mxu1 }
  0xad   :  { %v363_v60 = vpop.f32.mrf.mxu2 }
  0xae   :  { %v376_v63 = vpop.f32.mrf.mxu3  ;;  %v387_v0 = vpop.f32.mrf.mxu0 }
  0xaf   :  { %v388_v1 = vadd.f32 %v387_v0, %v375_v62 }
  0xb1   :  { %vm391_vm1 = vcmp.gt.f32.partialorder %v388_v1, 0.0  ;;  %v394_v2 = vmul.f32 %v729_v61, %v388_v1 }
  0xb3   :  { %v395_v3 = vsel %vm391_vm1, %v388_v1, %v394_v2 }
  0xb4   :  { %v396_v4 = vpack.c.bf16 %v395_v3, %v395_v3 }
  0xb6   :  { %v389_v5 = vpop.f32.mrf.mxu0  ;;  %473 = vmatmul.bf16.vlgmr.msrb.gmra.mxu1 %v396_v4 }
 0x133   :  { %v474_v7 = vpop.f32.mrf.mxu1 }
 0x134   :  { %v475_v8 = vadd.f32 %v730_v6, %v474_v7 }
 0x136   :  { %v683_v9 = vmul.f32 -1.442695, %v475_v8 }
 0x138   :  { %731 = vpow2.f32 %v683_v9 }
 0x13b   :  { %v476_v10 = vpop.f32.mrf.mxu1 }
 0x13e   :  { %v732_v11 = vpop.eup %731 }
 0x13f   :  { %v484_v12 = vadd.f32 1.0, %v732_v11 }
 0x141   :  { %733 = vrcp.f32 %v484_v12  ;;  %v496_v18 = vand.u32 2147483648, %v484_v12  ;;  %v494_v20 = vand.u32 2147483647, %v484_v12  ;;  %vm490_vm3 = vweird.f32 %v484_v12 }
 0x143   :  { %v497_v22 = vor.u32 1.1754944e-38, %v496_v18  ;;  %vm495_vm6 = vcmp.eq.f32.partialorder %v494_v20, 8.507059e+37 }
 0x147   :  { %v734_v13 = vpop.eup %733 }
 0x148   :  { %v486_v15 = vmul.f32 %v734_v13, %v484_v12  ;;  %vm491_vm2 = vweird.f32 %v734_v13 }
 0x149   :  { %vm492_vm5 = vmor %vm490_vm3, %vm491_vm2 }
 0x14a   :  { %v487_v16 = vsub.f32 1.0, %v486_v15 }
 0x14c   :  { %v488_v19 = vmul.f32 %v734_v13, %v487_v16 }
 0x14e   :  { %v489_v21 = vadd.f32 %v734_v13, %v488_v19 }
 0x150   :  { %v493_v23 = vsel %vm492_vm5, %v734_v13, %v489_v21 }
 0x151   :  { %v498_v24 = vsel %vm495_vm6, %v497_v22, %v493_v23 }
 0x152   :  { %v500_v25 = vsel %vm480_vm4, %v498_v24, %v475_v8 }
 0x153   :  { %501 = vst [vmem:[%s917_s5] sm:$0x3] %v500_v25 }

</bundles_post_ra>
